<compile_context>
chip_gen: v6e
topology: v6e:2x2x1
jax: 0.10.0
libtpu: 0.0.40
codegen_flags: <defaults>
</compile_context>

<pallas_src>
import jax
import jax.numpy as jnp
from jax import lax
from jax.experimental import pallas as pl
from jax.experimental.pallas import tpu as pltpu

# ---------------- config ----------------
B = 2          # batch
L = 8          # sequence length
D_MODEL = 32
D_INNER = 64
N_HEAD = 2
D_K = 16
D_V = 16
K1, P1 = 9, 4  # fft_conv1d_kernel[0], fft_conv1d_padding[0]
K2, P2 = 1, 0  # fft_conv1d_kernel[1], fft_conv1d_padding[1]  (kernel assumes K2 == 1)
LN_EPS = 1e-5
TEMPERATURE = float(D_K) ** 0.5
INV_TEMPERATURE = 1.0 / TEMPERATURE
BL = B * L
LANE = 128
QKV_W = 3 * N_HEAD * D_K   # 96


def _layer_norm(x, gamma, beta):
    mu = jnp.mean(x, axis=-1, keepdims=True)
    var = jnp.mean((x - mu) ** 2, axis=-1, keepdims=True)
    return (x - mu) * lax.rsqrt(var + LN_EPS) * gamma + beta


def _fft_block_kernel(x_ref, mm_ref, wqkv_ref, wo_ref, w1_ref, w2_ref, vec_ref,
                      out_ref, attn_ref):
    x = x_ref[...]                               # (B*L, D_MODEL) f32
    x_bf = x.astype(jnp.bfloat16)
    npm = mm_ref[:, L:L + 1]                     # (B*L, 1) non-pad mask

    # consolidated parameter-vector slab: one (8,128) tile, static slices
    bqkv = vec_ref[0:1, 0:QKV_W]
    bo   = vec_ref[1:2, 0:D_MODEL]
    g1   = vec_ref[2:3, 0:D_MODEL]
    be1  = vec_ref[3:4, 0:D_MODEL]
    b1   = vec_ref[4:5, 0:D_INNER]
    b2   = vec_ref[5:6, 0:D_MODEL]
    g2   = vec_ref[6:7, 0:D_MODEL]
    be2  = vec_ref[7:8, 0:D_MODEL]

    # ---- fused Q/K/V projection (bf16 MXU operands, f32 accumulation) ----
    # 1/sqrt(d_k) was folded into the Q columns of wqkv/bqkv host-side.
    qkv = jnp.dot(x_bf, wqkv_ref[...], preferred_element_type=jnp.float32) + bqkv
    QW = N_HEAD * D_K
    q_all = qkv[:, 0:QW]
    k_all = qkv[:, QW:2 * QW]
    v_all = qkv[:, 2 * QW:2 * QW + N_HEAD * D_V]

    wo = wo_ref[...]                             # (N_HEAD*D_V, D_MODEL) bf16

    # ---- multi-head self attention, output projection folded per head ----
    # TODO(synk): per-head lane sub-slices (offset h*16) may lower to lane
    # rotates; acceptable at this size (re-check Mosaic dump when scaling up).
    attn_mats = [[None] * B for _ in range(N_HEAD)]
    o_rows = []
    for b in range(B):
        am_b = mm_ref[b * L:(b + 1) * L, 0:L]    # (L, L), 1.0 == masked key
        o_b = jnp.zeros((L, D_MODEL), dtype=jnp.float32)
        for h in range(N_HEAD):
            qh = q_all[b * L:(b + 1) * L, h * D_K:(h + 1) * D_K].astype(jnp.bfloat16)
            kh = k_all[b * L:(b + 1) * L, h * D_K:(h + 1) * D_K].astype(jnp.bfloat16)
            vh = v_all[b * L:(b + 1) * L, h * D_V:(h + 1) * D_V].astype(jnp.bfloat16)
            # q @ k^T without an explicit transpose: contract dim 1 of both
            s = lax.dot_general(qh, kh, (((1,), (1,)), ((), ())),
                                preferred_element_type=jnp.float32)
            s = jnp.where(am_b > 0.5, -1e30, s)
            p = jnp.exp(s - jnp.max(s, axis=-1, keepdims=True))
            a = p * pl.reciprocal(jnp.sum(p, axis=-1, keepdims=True), approx=True)
            attn_mats[h][b] = a
            hv = jnp.dot(a.astype(jnp.bfloat16), vh,
                         preferred_element_type=jnp.float32)
            o_b = o_b + jnp.dot(hv.astype(jnp.bfloat16),
                                wo[h * D_V:(h + 1) * D_V, :],
                                preferred_element_type=jnp.float32)
        o_rows.append(o_b)
    o = jnp.concatenate(o_rows, axis=0) + bo     # (B*L, D_MODEL)

    attn_out = _layer_norm(o + x, g1, be1)
    enc = attn_out * npm                         # non_pad_mask after attention
    enc_bf = enc.astype(jnp.bfloat16)

    # ---- FFN: Conv1d(k=9, pad=4) as 9 accumulating taps (no im2col concat) ----
    zpad = jnp.zeros((P1, D_MODEL), dtype=jnp.bfloat16)
    h_rows = []
    for b in range(B):
        xp_b = jnp.concatenate([zpad, enc_bf[b * L:(b + 1) * L, :], zpad], axis=0)
        acc = jnp.zeros((L, D_INNER), dtype=jnp.float32)
        for dt in range(K1):
            acc = acc + jnp.dot(xp_b[dt:dt + L, :], w1_ref[dt],
                                preferred_element_type=jnp.float32)
        h_rows.append(acc)
    h1 = jnp.maximum(jnp.concatenate(h_rows, axis=0) + b1, 0.0)   # (B*L, D_INNER)

    # Conv1d(k=1) == plain matmul
    y = jnp.dot(h1.astype(jnp.bfloat16), w2_ref[...],
                preferred_element_type=jnp.float32) + b2
    y = _layer_norm(y + enc, g2, be2) * npm                       # (B*L, D_MODEL)

    # ---- lane-dense (unmasked 128-lane) stores; host slices the pad away ----
    out_ref[...] = jnp.concatenate(
        [y, jnp.zeros((BL, LANE - D_MODEL), dtype=jnp.float32)], axis=1)
    attn_stack = jnp.concatenate(
        [attn_mats[h][b] for h in range(N_HEAD) for b in range(B)], axis=0)
    attn_ref[...] = jnp.concatenate(
        [attn_stack, jnp.zeros((N_HEAD * B * L, LANE - L), dtype=jnp.float32)],
        axis=1)


def _pad_row(v, width=LANE):
    v = v.reshape(-1).astype(jnp.float32)
    return jnp.pad(v, (0, width - v.shape[0]))


def fft_block(x, slf_attn_mask, non_pad_mask, params):
    """Returns (enc_output (B,L,D), enc_slf_attn (N_HEAD*B, L, L)) like the PyTorch module."""
    x2 = x.reshape(BL, D_MODEL).astype(jnp.float32)
    # mask slab: [:, :L] = slf_attn_mask rows, [:, L] = non_pad_mask
    mm = jnp.concatenate(
        [slf_attn_mask.reshape(BL, L), non_pad_mask.reshape(BL, 1)],
        axis=1).astype(jnp.float32)

    # bf16 MXU weights (f32 accumulation in-kernel); 1/sqrt(d_k) folded into Q
    wqkv = jnp.concatenate(
        [params["wq"] * INV_TEMPERATURE, params["wk"], params["wv"]],
        axis=1).astype(jnp.bfloat16)                                # (D, 96)
    wo = params["wo"].astype(jnp.bfloat16)                          # (n*dv, D)
    w1 = params["w1"].astype(jnp.bfloat16)                          # (K1, D, D_INNER)
    w2 = params["w2"].reshape(K2 * D_INNER, D_MODEL).astype(jnp.bfloat16)  # K2 == 1

    # one (8,128) f32 slab for all 1-row parameter vectors
    vec = jnp.stack([
        _pad_row(jnp.concatenate(
            [params["bq"] * INV_TEMPERATURE, params["bk"], params["bv"]], axis=1)),
        _pad_row(params["bo"]),
        _pad_row(params["g1"]),
        _pad_row(params["be1"]),
        _pad_row(params["b1"]),
        _pad_row(params["b2"]),
        _pad_row(params["g2"]),
        _pad_row(params["be2"]),
    ], axis=0)                                                      # (8, 128)

    out_shape = (
        jax.ShapeDtypeStruct((BL, LANE), jnp.float32),
        jax.ShapeDtypeStruct((N_HEAD * B * L, LANE), jnp.float32),
    )
    out_p, attn_p = pl.pallas_call(
        _fft_block_kernel,
        out_shape=out_shape,
        compiler_params=pltpu.CompilerParams(vmem_limit_bytes=32 * 1024 * 1024),
    )(x2, mm, wqkv, wo, w1, w2, vec)

    enc_out = out_p[:, :D_MODEL].reshape(B, L, D_MODEL)
    # PyTorch MHA folds heads into the batch dim as (n_head * B, L, L)
    enc_slf_attn = attn_p[:, :L].reshape(N_HEAD * B, L, L)
    return enc_out, enc_slf_attn


# ---------------- pure-JAX f32 reference (for correctness check) ----------------
def _ref_forward(x, am, npm, p):
    def ln(v, g, b):
        mu = v.mean(-1, keepdims=True)
        var = ((v - mu) ** 2).mean(-1, keepdims=True)
        return (v - mu) / jnp.sqrt(var + LN_EPS) * g + b

    q = (x @ p["wq"] + p["bq"]).reshape(B, L, N_HEAD, D_K).transpose(0, 2, 1, 3)
    k = (x @ p["wk"] + p["bk"]).reshape(B, L, N_HEAD, D_K).transpose(0, 2, 1, 3)
    v = (x @ p["wv"] + p["bv"]).reshape(B, L, N_HEAD, D_V).transpose(0, 2, 1, 3)
    s = jnp.einsum("bhqd,bhkd->bhqk", q, k) / TEMPERATURE
    s = jnp.where(am[:, None] > 0.5, -1e30, s)
    a = jax.nn.softmax(s, axis=-1)
    o = jnp.einsum("bhqk,bhkd->bhqd", a, v).transpose(0, 2, 1, 3).reshape(B, L, N_HEAD * D_V)
    o = o @ p["wo"] + p["bo"]
    attn_out = ln(o + x, p["g1"], p["be1"])
    enc = attn_out * npm
    xp = jnp.pad(enc, ((0, 0), (P1, P1), (0, 0)))
    h = sum(xp[:, dt:dt + L] @ p["w1"][dt] for dt in range(K1)) + p["b1"]
    h = jax.nn.relu(h)
    hp = jnp.pad(h, ((0, 0), (P2, P2), (0, 0)))
    y = sum(hp[:, dt:dt + L] @ p["w2"][dt] for dt in range(K2)) + p["b2"]
    y = ln(y + enc, p["g2"], p["be2"]) * npm
    return y, a


def _make_params(key):
    ks = jax.random.split(key, 16)
    n = lambda k, shape, s=0.1: (s * jax.random.normal(k, shape)).astype(jnp.float32)
    return {
        "wq": n(ks[0], (D_MODEL, N_HEAD * D_K)), "bq": n(ks[1], (1, N_HEAD * D_K)),
        "wk": n(ks[2], (D_MODEL, N_HEAD * D_K)), "bk": n(ks[3], (1, N_HEAD * D_K)),
        "wv": n(ks[4], (D_MODEL, N_HEAD * D_V)), "bv": n(ks[5], (1, N_HEAD * D_V)),
        "wo": n(ks[6], (N_HEAD * D_V, D_MODEL)), "bo": n(ks[7], (1, D_MODEL)),
        "g1": (1.0 + n(ks[8], (1, D_MODEL))), "be1": n(ks[9], (1, D_MODEL)),
        # Conv1d weights stored as (kernel, in_ch, out_ch) == torch weight.permute(2, 1, 0)
        "w1": n(ks[10], (K1, D_MODEL, D_INNER)), "b1": n(ks[11], (1, D_INNER)),
        "w2": n(ks[12], (K2, D_INNER, D_MODEL)), "b2": n(ks[13], (1, D_MODEL)),
        "g2": (1.0 + n(ks[14], (1, D_MODEL))), "be2": n(ks[15], (1, D_MODEL)),
    }


if __name__ == "__main__":
    key = jax.random.PRNGKey(0)
    k_x, k_p = jax.random.split(key)
    x = jax.random.normal(k_x, (B, L, D_MODEL), dtype=jnp.float32)
    params = _make_params(k_p)

    # padding masks: batch 0 fully valid, batch 1 has last 2 positions padded
    lengths = jnp.array([L, L - 2], dtype=jnp.int32)
    pos = jnp.arange(L)
    non_pad_mask = (pos[None, :] < lengths[:, None]).astype(jnp.float32)[:, :, None]  # (B,L,1)
    key_pad = (pos[None, :] >= lengths[:, None]).astype(jnp.float32)                  # (B,L)
    slf_attn_mask = jnp.broadcast_to(key_pad[:, None, :], (B, L, L)).astype(jnp.float32)

    enc_out, enc_slf_attn = fft_block(x, slf_attn_mask, non_pad_mask, params)
    jax.block_until_ready((enc_out, enc_slf_attn))

    ref_out, ref_attn = _ref_forward(x, slf_attn_mask, non_pad_mask, params)
    ref_attn_fold = ref_attn.transpose(1, 0, 2, 3).reshape(N_HEAD * B, L, L)
    assert enc_out.shape == (B, L, D_MODEL)
    assert enc_slf_attn.shape == (N_HEAD * B, L, L)
    # tolerances loosened vs a pure-f32 kernel: MXU operands are bf16 (f32
    # accumulation) and the softmax denominator uses the approximate EUP
    # reciprocal; the f32 reference above is the exact oracle.
    assert jnp.allclose(enc_out, ref_out, atol=5e-2, rtol=5e-2)
    assert jnp.allclose(enc_slf_attn, ref_attn_fold, atol=2e-2, rtol=2e-2)

    print("KERNEL_OK")
</pallas_src>

<mosaic_0001>
module attributes {stable_mosaic.version = 11 : i64} {
  func.func @_fft_block_kernel(%arg0: memref<16x32xf32, #tpu.memory_space<vmem>>, %arg1: memref<16x9xf32, #tpu.memory_space<vmem>>, %arg2: memref<32x96xbf16, #tpu.memory_space<vmem>>, %arg3: memref<32x32xbf16, #tpu.memory_space<vmem>>, %arg4: memref<9x32x64xbf16, #tpu.memory_space<vmem>>, %arg5: memref<64x32xbf16, #tpu.memory_space<vmem>>, %arg6: memref<8x128xf32, #tpu.memory_space<vmem>>, %arg7: memref<16x128xf32, #tpu.memory_space<vmem>>, %arg8: memref<32x128xf32, #tpu.memory_space<vmem>>) attributes {dimension_semantics = [], scalar_prefetch = 0 : i64, scratch_operands = 0 : i64, tpu.core_type = #tpu.core_type<tc>} {
    %c0 = arith.constant 0 : index
    %c0_0 = arith.constant 0 : index
    %0 = vector.load %arg0[%c0, %c0_0] : memref<16x32xf32, #tpu.memory_space<vmem>>, vector<16x32xf32>
    %1 = arith.truncf %0 : vector<16x32xf32> to vector<16x32xbf16>
    %c0_1 = arith.constant 0 : index
    %c8 = arith.constant 8 : index
    %2 = vector.load %arg1[%c0_1, %c8] : memref<16x9xf32, #tpu.memory_space<vmem>>, vector<16x1xf32>
    %c0_2 = arith.constant 0 : index
    %c0_3 = arith.constant 0 : index
    %3 = vector.load %arg6[%c0_2, %c0_3] : memref<8x128xf32, #tpu.memory_space<vmem>>, vector<1x96xf32>
    %c1 = arith.constant 1 : index
    %c0_4 = arith.constant 0 : index
    %4 = vector.load %arg6[%c1, %c0_4] : memref<8x128xf32, #tpu.memory_space<vmem>>, vector<1x32xf32>
    %c2 = arith.constant 2 : index
    %c0_5 = arith.constant 0 : index
    %5 = vector.load %arg6[%c2, %c0_5] : memref<8x128xf32, #tpu.memory_space<vmem>>, vector<1x32xf32>
    %c3 = arith.constant 3 : index
    %c0_6 = arith.constant 0 : index
    %6 = vector.load %arg6[%c3, %c0_6] : memref<8x128xf32, #tpu.memory_space<vmem>>, vector<1x32xf32>
    %c4 = arith.constant 4 : index
    %c0_7 = arith.constant 0 : index
    %7 = vector.load %arg6[%c4, %c0_7] : memref<8x128xf32, #tpu.memory_space<vmem>>, vector<1x64xf32>
    %c5 = arith.constant 5 : index
    %c0_8 = arith.constant 0 : index
    %8 = vector.load %arg6[%c5, %c0_8] : memref<8x128xf32, #tpu.memory_space<vmem>>, vector<1x32xf32>
    %c6 = arith.constant 6 : index
    %c0_9 = arith.constant 0 : index
    %9 = vector.load %arg6[%c6, %c0_9] : memref<8x128xf32, #tpu.memory_space<vmem>>, vector<1x32xf32>
    %c7 = arith.constant 7 : index
    %c0_10 = arith.constant 0 : index
    %10 = vector.load %arg6[%c7, %c0_10] : memref<8x128xf32, #tpu.memory_space<vmem>>, vector<1x32xf32>
    %c0_11 = arith.constant 0 : index
    %c0_12 = arith.constant 0 : index
    %11 = vector.load %arg2[%c0_11, %c0_12] : memref<32x96xbf16, #tpu.memory_space<vmem>>, vector<32x96xbf16>
    %cst = arith.constant dense<0.000000e+00> : vector<16x96xf32>
    %12 = tpu.matmul %1, %11, %cst {dimension_numbers = #tpu.dot_dimension_numbers<[1], [0], [0], [1], [0, 0, 1, 1], [], []>} : vector<16x32xbf16>, vector<32x96xbf16>, vector<16x96xf32> -> vector<16x96xf32>
    %13 = vector.broadcast %3 : vector<1x96xf32> to vector<16x96xf32>
    %14 = arith.addf %12, %13 : vector<16x96xf32>
    %15 = vector.extract_strided_slice %14 {offsets = [0, 0], sizes = [16, 32], strides = [1, 1]} : vector<16x96xf32> to vector<16x32xf32>
    %16 = vector.extract_strided_slice %14 {offsets = [0, 32], sizes = [16, 32], strides = [1, 1]} : vector<16x96xf32> to vector<16x32xf32>
    %17 = vector.extract_strided_slice %14 {offsets = [0, 64], sizes = [16, 32], strides = [1, 1]} : vector<16x96xf32> to vector<16x32xf32>
    %c0_13 = arith.constant 0 : index
    %c0_14 = arith.constant 0 : index
    %18 = vector.load %arg3[%c0_13, %c0_14] : memref<32x32xbf16, #tpu.memory_space<vmem>>, vector<32x32xbf16>
    %c0_15 = arith.constant 0 : index
    %c0_16 = arith.constant 0 : index
    %19 = vector.load %arg1[%c0_15, %c0_16] : memref<16x9xf32, #tpu.memory_space<vmem>>, vector<8x8xf32>
    %cst_17 = arith.constant 0.000000e+00 : f32
    %20 = vector.broadcast %cst_17 : f32 to vector<8x32xf32>
    %21 = vector.extract_strided_slice %15 {offsets = [0, 0], sizes = [8, 16], strides = [1, 1]} : vector<16x32xf32> to vector<8x16xf32>
    %22 = arith.truncf %21 : vector<8x16xf32> to vector<8x16xbf16>
    %23 = vector.extract_strided_slice %16 {offsets = [0, 0], sizes = [8, 16], strides = [1, 1]} : vector<16x32xf32> to vector<8x16xf32>
    %24 = arith.truncf %23 : vector<8x16xf32> to vector<8x16xbf16>
    %25 = vector.extract_strided_slice %17 {offsets = [0, 0], sizes = [8, 16], strides = [1, 1]} : vector<16x32xf32> to vector<8x16xf32>
    %26 = arith.truncf %25 : vector<8x16xf32> to vector<8x16xbf16>
    %cst_18 = arith.constant dense<0.000000e+00> : vector<8x8xf32>
    %27 = tpu.matmul %22, %24, %cst_18 {dimension_numbers = #tpu.dot_dimension_numbers<[1], [1], [0], [0], [0, 0, 1, 0], [], []>} : vector<8x16xbf16>, vector<8x16xbf16>, vector<8x8xf32> -> vector<8x8xf32>
    %cst_19 = arith.constant 5.000000e-01 : f32
    %28 = vector.broadcast %cst_19 : f32 to vector<8x8xf32>
    %29 = arith.cmpf ogt, %19, %28 : vector<8x8xf32>
    %cst_20 = arith.constant -1.000000e+30 : f32
    %30 = vector.broadcast %cst_20 : f32 to vector<8x8xf32>
    %31 = arith.select %29, %30, %27 : vector<8x8xi1>, vector<8x8xf32>
    %cst_21 = arith.constant dense<0xFF800000> : vector<8xf32>
    %32 = vector.multi_reduction <maximumf>, %31, %cst_21 [1] : vector<8x8xf32> to vector<8xf32>
    %33 = vector.shape_cast %32 : vector<8xf32> to vector<8x1xf32>
    %34 = vector.broadcast %33 : vector<8x1xf32> to vector<8x8xf32>
    %35 = arith.subf %31, %34 : vector<8x8xf32>
    %36 = math.exp %35 : vector<8x8xf32>
    %cst_22 = arith.constant dense<0.000000e+00> : vector<8xf32>
    %37 = vector.multi_reduction <add>, %36, %cst_22 [1] : vector<8x8xf32> to vector<8xf32>
    %38 = vector.shape_cast %37 : vector<8xf32> to vector<8x1xf32>
    %39 = tpu.reciprocal %38 {approx = true} : vector<8x1xf32> -> vector<8x1xf32>
    %40 = vector.broadcast %39 : vector<8x1xf32> to vector<8x8xf32>
    %41 = arith.mulf %36, %40 : vector<8x8xf32>
    %42 = arith.truncf %41 : vector<8x8xf32> to vector<8x8xbf16>
    %cst_23 = arith.constant dense<0.000000e+00> : vector<8x16xf32>
    %43 = tpu.matmul %42, %26, %cst_23 {dimension_numbers = #tpu.dot_dimension_numbers<[1], [0], [0], [1], [0, 0, 1, 1], [], []>} : vector<8x8xbf16>, vector<8x16xbf16>, vector<8x16xf32> -> vector<8x16xf32>
    %44 = arith.truncf %43 : vector<8x16xf32> to vector<8x16xbf16>
    %45 = vector.extract_strided_slice %18 {offsets = [0, 0], sizes = [16, 32], strides = [1, 1]} : vector<32x32xbf16> to vector<16x32xbf16>
    %cst_24 = arith.constant dense<0.000000e+00> : vector<8x32xf32>
    %46 = tpu.matmul %44, %45, %cst_24 {dimension_numbers = #tpu.dot_dimension_numbers<[1], [0], [0], [1], [0, 0, 1, 1], [], []>} : vector<8x16xbf16>, vector<16x32xbf16>, vector<8x32xf32> -> vector<8x32xf32>
    %47 = arith.addf %20, %46 : vector<8x32xf32>
    %48 = vector.extract_strided_slice %15 {offsets = [0, 16], sizes = [8, 16], strides = [1, 1]} : vector<16x32xf32> to vector<8x16xf32>
    %49 = arith.truncf %48 : vector<8x16xf32> to vector<8x16xbf16>
    %50 = vector.extract_strided_slice %16 {offsets = [0, 16], sizes = [8, 16], strides = [1, 1]} : vector<16x32xf32> to vector<8x16xf32>
    %51 = arith.truncf %50 : vector<8x16xf32> to vector<8x16xbf16>
    %52 = vector.extract_strided_slice %17 {offsets = [0, 16], sizes = [8, 16], strides = [1, 1]} : vector<16x32xf32> to vector<8x16xf32>
    %53 = arith.truncf %52 : vector<8x16xf32> to vector<8x16xbf16>
    %cst_25 = arith.constant dense<0.000000e+00> : vector<8x8xf32>
    %54 = tpu.matmul %49, %51, %cst_25 {dimension_numbers = #tpu.dot_dimension_numbers<[1], [1], [0], [0], [0, 0, 1, 0], [], []>} : vector<8x16xbf16>, vector<8x16xbf16>, vector<8x8xf32> -> vector<8x8xf32>
    %cst_26 = arith.constant 5.000000e-01 : f32
    %55 = vector.broadcast %cst_26 : f32 to vector<8x8xf32>
    %56 = arith.cmpf ogt, %19, %55 : vector<8x8xf32>
    %cst_27 = arith.constant -1.000000e+30 : f32
    %57 = vector.broadcast %cst_27 : f32 to vector<8x8xf32>
    %58 = arith.select %56, %57, %54 : vector<8x8xi1>, vector<8x8xf32>
    %cst_28 = arith.constant dense<0xFF800000> : vector<8xf32>
    %59 = vector.multi_reduction <maximumf>, %58, %cst_28 [1] : vector<8x8xf32> to vector<8xf32>
    %60 = vector.shape_cast %59 : vector<8xf32> to vector<8x1xf32>
    %61 = vector.broadcast %60 : vector<8x1xf32> to vector<8x8xf32>
    %62 = arith.subf %58, %61 : vector<8x8xf32>
    %63 = math.exp %62 : vector<8x8xf32>
    %cst_29 = arith.constant dense<0.000000e+00> : vector<8xf32>
    %64 = vector.multi_reduction <add>, %63, %cst_29 [1] : vector<8x8xf32> to vector<8xf32>
    %65 = vector.shape_cast %64 : vector<8xf32> to vector<8x1xf32>
    %66 = tpu.reciprocal %65 {approx = true} : vector<8x1xf32> -> vector<8x1xf32>
    %67 = vector.broadcast %66 : vector<8x1xf32> to vector<8x8xf32>
    %68 = arith.mulf %63, %67 : vector<8x8xf32>
    %69 = arith.truncf %68 : vector<8x8xf32> to vector<8x8xbf16>
    %cst_30 = arith.constant dense<0.000000e+00> : vector<8x16xf32>
    %70 = tpu.matmul %69, %53, %cst_30 {dimension_numbers = #tpu.dot_dimension_numbers<[1], [0], [0], [1], [0, 0, 1, 1], [], []>} : vector<8x8xbf16>, vector<8x16xbf16>, vector<8x16xf32> -> vector<8x16xf32>
    %71 = arith.truncf %70 : vector<8x16xf32> to vector<8x16xbf16>
    %72 = vector.extract_strided_slice %18 {offsets = [16, 0], sizes = [16, 32], strides = [1, 1]} : vector<32x32xbf16> to vector<16x32xbf16>
    %cst_31 = arith.constant dense<0.000000e+00> : vector<8x32xf32>
    %73 = tpu.matmul %71, %72, %cst_31 {dimension_numbers = #tpu.dot_dimension_numbers<[1], [0], [0], [1], [0, 0, 1, 1], [], []>} : vector<8x16xbf16>, vector<16x32xbf16>, vector<8x32xf32> -> vector<8x32xf32>
    %74 = arith.addf %47, %73 : vector<8x32xf32>
    %c8_32 = arith.constant 8 : index
    %c0_33 = arith.constant 0 : index
    %75 = vector.load %arg1[%c8_32, %c0_33] : memref<16x9xf32, #tpu.memory_space<vmem>>, vector<8x8xf32>
    %cst_34 = arith.constant 0.000000e+00 : f32
    %76 = vector.broadcast %cst_34 : f32 to vector<8x32xf32>
    %77 = vector.extract_strided_slice %15 {offsets = [8, 0], sizes = [8, 16], strides = [1, 1]} : vector<16x32xf32> to vector<8x16xf32>
    %78 = arith.truncf %77 : vector<8x16xf32> to vector<8x16xbf16>
    %79 = vector.extract_strided_slice %16 {offsets = [8, 0], sizes = [8, 16], strides = [1, 1]} : vector<16x32xf32> to vector<8x16xf32>
    %80 = arith.truncf %79 : vector<8x16xf32> to vector<8x16xbf16>
    %81 = vector.extract_strided_slice %17 {offsets = [8, 0], sizes = [8, 16], strides = [1, 1]} : vector<16x32xf32> to vector<8x16xf32>
    %82 = arith.truncf %81 : vector<8x16xf32> to vector<8x16xbf16>
    %cst_35 = arith.constant dense<0.000000e+00> : vector<8x8xf32>
    %83 = tpu.matmul %78, %80, %cst_35 {dimension_numbers = #tpu.dot_dimension_numbers<[1], [1], [0], [0], [0, 0, 1, 0], [], []>} : vector<8x16xbf16>, vector<8x16xbf16>, vector<8x8xf32> -> vector<8x8xf32>
    %cst_36 = arith.constant 5.000000e-01 : f32
    %84 = vector.broadcast %cst_36 : f32 to vector<8x8xf32>
    %85 = arith.cmpf ogt, %75, %84 : vector<8x8xf32>
    %cst_37 = arith.constant -1.000000e+30 : f32
    %86 = vector.broadcast %cst_37 : f32 to vector<8x8xf32>
    %87 = arith.select %85, %86, %83 : vector<8x8xi1>, vector<8x8xf32>
    %cst_38 = arith.constant dense<0xFF800000> : vector<8xf32>
    %88 = vector.multi_reduction <maximumf>, %87, %cst_38 [1] : vector<8x8xf32> to vector<8xf32>
    %89 = vector.shape_cast %88 : vector<8xf32> to vector<8x1xf32>
    %90 = vector.broadcast %89 : vector<8x1xf32> to vector<8x8xf32>
    %91 = arith.subf %87, %90 : vector<8x8xf32>
    %92 = math.exp %91 : vector<8x8xf32>
    %cst_39 = arith.constant dense<0.000000e+00> : vector<8xf32>
    %93 = vector.multi_reduction <add>, %92, %cst_39 [1] : vector<8x8xf32> to vector<8xf32>
    %94 = vector.shape_cast %93 : vector<8xf32> to vector<8x1xf32>
    %95 = tpu.reciprocal %94 {approx = true} : vector<8x1xf32> -> vector<8x1xf32>
    %96 = vector.broadcast %95 : vector<8x1xf32> to vector<8x8xf32>
    %97 = arith.mulf %92, %96 : vector<8x8xf32>
    %98 = arith.truncf %97 : vector<8x8xf32> to vector<8x8xbf16>
    %cst_40 = arith.constant dense<0.000000e+00> : vector<8x16xf32>
    %99 = tpu.matmul %98, %82, %cst_40 {dimension_numbers = #tpu.dot_dimension_numbers<[1], [0], [0], [1], [0, 0, 1, 1], [], []>} : vector<8x8xbf16>, vector<8x16xbf16>, vector<8x16xf32> -> vector<8x16xf32>
    %100 = arith.truncf %99 : vector<8x16xf32> to vector<8x16xbf16>
    %101 = vector.extract_strided_slice %18 {offsets = [0, 0], sizes = [16, 32], strides = [1, 1]} : vector<32x32xbf16> to vector<16x32xbf16>
    %cst_41 = arith.constant dense<0.000000e+00> : vector<8x32xf32>
    %102 = tpu.matmul %100, %101, %cst_41 {dimension_numbers = #tpu.dot_dimension_numbers<[1], [0], [0], [1], [0, 0, 1, 1], [], []>} : vector<8x16xbf16>, vector<16x32xbf16>, vector<8x32xf32> -> vector<8x32xf32>
    %103 = arith.addf %76, %102 : vector<8x32xf32>
    %104 = vector.extract_strided_slice %15 {offsets = [8, 16], sizes = [8, 16], strides = [1, 1]} : vector<16x32xf32> to vector<8x16xf32>
    %105 = arith.truncf %104 : vector<8x16xf32> to vector<8x16xbf16>
    %106 = vector.extract_strided_slice %16 {offsets = [8, 16], sizes = [8, 16], strides = [1, 1]} : vector<16x32xf32> to vector<8x16xf32>
    %107 = arith.truncf %106 : vector<8x16xf32> to vector<8x16xbf16>
    %108 = vector.extract_strided_slice %17 {offsets = [8, 16], sizes = [8, 16], strides = [1, 1]} : vector<16x32xf32> to vector<8x16xf32>
    %109 = arith.truncf %108 : vector<8x16xf32> to vector<8x16xbf16>
    %cst_42 = arith.constant dense<0.000000e+00> : vector<8x8xf32>
    %110 = tpu.matmul %105, %107, %cst_42 {dimension_numbers = #tpu.dot_dimension_numbers<[1], [1], [0], [0], [0, 0, 1, 0], [], []>} : vector<8x16xbf16>, vector<8x16xbf16>, vector<8x8xf32> -> vector<8x8xf32>
    %cst_43 = arith.constant 5.000000e-01 : f32
    %111 = vector.broadcast %cst_43 : f32 to vector<8x8xf32>
    %112 = arith.cmpf ogt, %75, %111 : vector<8x8xf32>
    %cst_44 = arith.constant -1.000000e+30 : f32
    %113 = vector.broadcast %cst_44 : f32 to vector<8x8xf32>
    %114 = arith.select %112, %113, %110 : vector<8x8xi1>, vector<8x8xf32>
    %cst_45 = arith.constant dense<0xFF800000> : vector<8xf32>
    %115 = vector.multi_reduction <maximumf>, %114, %cst_45 [1] : vector<8x8xf32> to vector<8xf32>
    %116 = vector.shape_cast %115 : vector<8xf32> to vector<8x1xf32>
    %117 = vector.broadcast %116 : vector<8x1xf32> to vector<8x8xf32>
    %118 = arith.subf %114, %117 : vector<8x8xf32>
    %119 = math.exp %118 : vector<8x8xf32>
    %cst_46 = arith.constant dense<0.000000e+00> : vector<8xf32>
    %120 = vector.multi_reduction <add>, %119, %cst_46 [1] : vector<8x8xf32> to vector<8xf32>
    %121 = vector.shape_cast %120 : vector<8xf32> to vector<8x1xf32>
    %122 = tpu.reciprocal %121 {approx = true} : vector<8x1xf32> -> vector<8x1xf32>
    %123 = vector.broadcast %122 : vector<8x1xf32> to vector<8x8xf32>
    %124 = arith.mulf %119, %123 : vector<8x8xf32>
    %125 = arith.truncf %124 : vector<8x8xf32> to vector<8x8xbf16>
    %cst_47 = arith.constant dense<0.000000e+00> : vector<8x16xf32>
    %126 = tpu.matmul %125, %109, %cst_47 {dimension_numbers = #tpu.dot_dimension_numbers<[1], [0], [0], [1], [0, 0, 1, 1], [], []>} : vector<8x8xbf16>, vector<8x16xbf16>, vector<8x16xf32> -> vector<8x16xf32>
    %127 = arith.truncf %126 : vector<8x16xf32> to vector<8x16xbf16>
    %128 = vector.extract_strided_slice %18 {offsets = [16, 0], sizes = [16, 32], strides = [1, 1]} : vector<32x32xbf16> to vector<16x32xbf16>
    %cst_48 = arith.constant dense<0.000000e+00> : vector<8x32xf32>
    %129 = tpu.matmul %127, %128, %cst_48 {dimension_numbers = #tpu.dot_dimension_numbers<[1], [0], [0], [1], [0, 0, 1, 1], [], []>} : vector<8x16xbf16>, vector<16x32xbf16>, vector<8x32xf32> -> vector<8x32xf32>
    %130 = arith.addf %103, %129 : vector<8x32xf32>
    %131 = tpu.concatenate %74, %130 in 0 : vector<8x32xf32>, vector<8x32xf32> -> vector<16x32xf32>
    %132 = vector.broadcast %4 : vector<1x32xf32> to vector<16x32xf32>
    %133 = arith.addf %131, %132 : vector<16x32xf32>
    %134 = arith.addf %133, %0 : vector<16x32xf32>
    %cst_49 = arith.constant dense<0.000000e+00> : vector<16xf32>
    %135 = vector.multi_reduction <add>, %134, %cst_49 [1] : vector<16x32xf32> to vector<16xf32>
    %136 = vector.shape_cast %135 : vector<16xf32> to vector<16x1xf32>
    %cst_50 = arith.constant 3.200000e+01 : f32
    %137 = vector.broadcast %cst_50 : f32 to vector<16x1xf32>
    %138 = arith.divf %136, %137 : vector<16x1xf32>
    %139 = vector.broadcast %138 : vector<16x1xf32> to vector<16x32xf32>
    %140 = arith.subf %134, %139 : vector<16x32xf32>
    %141 = arith.mulf %140, %140 : vector<16x32xf32>
    %cst_51 = arith.constant dense<0.000000e+00> : vector<16xf32>
    %142 = vector.multi_reduction <add>, %141, %cst_51 [1] : vector<16x32xf32> to vector<16xf32>
    %143 = vector.shape_cast %142 : vector<16xf32> to vector<16x1xf32>
    %cst_52 = arith.constant 3.200000e+01 : f32
    %144 = vector.broadcast %cst_52 : f32 to vector<16x1xf32>
    %145 = arith.divf %143, %144 : vector<16x1xf32>
    %146 = vector.broadcast %138 : vector<16x1xf32> to vector<16x32xf32>
    %147 = arith.subf %134, %146 : vector<16x32xf32>
    %cst_53 = arith.constant 9.99999974E-6 : f32
    %148 = vector.broadcast %cst_53 : f32 to vector<16x1xf32>
    %149 = arith.addf %145, %148 : vector<16x1xf32>
    %150 = math.rsqrt %149 : vector<16x1xf32>
    %151 = vector.broadcast %150 : vector<16x1xf32> to vector<16x32xf32>
    %152 = arith.mulf %147, %151 : vector<16x32xf32>
    %153 = vector.broadcast %5 : vector<1x32xf32> to vector<16x32xf32>
    %154 = arith.mulf %152, %153 : vector<16x32xf32>
    %155 = vector.broadcast %6 : vector<1x32xf32> to vector<16x32xf32>
    %156 = arith.addf %154, %155 : vector<16x32xf32>
    %157 = vector.broadcast %2 : vector<16x1xf32> to vector<16x32xf32>
    %158 = arith.mulf %156, %157 : vector<16x32xf32>
    %159 = arith.truncf %158 : vector<16x32xf32> to vector<16x32xbf16>
    %cst_54 = arith.constant 0.000000e+00 : bf16
    %160 = vector.broadcast %cst_54 : bf16 to vector<4x32xbf16>
    %161 = vector.extract_strided_slice %159 {offsets = [0, 0], sizes = [8, 32], strides = [1, 1]} : vector<16x32xbf16> to vector<8x32xbf16>
    %162 = tpu.concatenate %160, %161, %160 in 0 : vector<4x32xbf16>, vector<8x32xbf16>, vector<4x32xbf16> -> vector<16x32xbf16>
    %cst_55 = arith.constant 0.000000e+00 : f32
    %163 = vector.broadcast %cst_55 : f32 to vector<8x64xf32>
    %164 = vector.extract_strided_slice %162 {offsets = [0, 0], sizes = [8, 32], strides = [1, 1]} : vector<16x32xbf16> to vector<8x32xbf16>
    %c0_56 = arith.constant 0 : index
    %c0_57 = arith.constant 0 : index
    %c0_58 = arith.constant 0 : index
    %165 = vector.load %arg4[%c0_56, %c0_57, %c0_58] : memref<9x32x64xbf16, #tpu.memory_space<vmem>>, vector<1x32x64xbf16>
    %166 = vector.shape_cast %165 : vector<1x32x64xbf16> to vector<32x64xbf16>
    %cst_59 = arith.constant dense<0.000000e+00> : vector<8x64xf32>
    %167 = tpu.matmul %164, %166, %cst_59 {dimension_numbers = #tpu.dot_dimension_numbers<[1], [0], [0], [1], [0, 0, 1, 1], [], []>} : vector<8x32xbf16>, vector<32x64xbf16>, vector<8x64xf32> -> vector<8x64xf32>
    %168 = arith.addf %163, %167 : vector<8x64xf32>
    %169 = vector.extract_strided_slice %162 {offsets = [1, 0], sizes = [8, 32], strides = [1, 1]} : vector<16x32xbf16> to vector<8x32xbf16>
    %c1_60 = arith.constant 1 : index
    %c0_61 = arith.constant 0 : index
    %c0_62 = arith.constant 0 : index
    %170 = vector.load %arg4[%c1_60, %c0_61, %c0_62] : memref<9x32x64xbf16, #tpu.memory_space<vmem>>, vector<1x32x64xbf16>
    %171 = vector.shape_cast %170 : vector<1x32x64xbf16> to vector<32x64xbf16>
    %cst_63 = arith.constant dense<0.000000e+00> : vector<8x64xf32>
    %172 = tpu.matmul %169, %171, %cst_63 {dimension_numbers = #tpu.dot_dimension_numbers<[1], [0], [0], [1], [0, 0, 1, 1], [], []>} : vector<8x32xbf16>, vector<32x64xbf16>, vector<8x64xf32> -> vector<8x64xf32>
    %173 = arith.addf %168, %172 : vector<8x64xf32>
    %174 = vector.extract_strided_slice %162 {offsets = [2, 0], sizes = [8, 32], strides = [1, 1]} : vector<16x32xbf16> to vector<8x32xbf16>
    %c2_64 = arith.constant 2 : index
    %c0_65 = arith.constant 0 : index
    %c0_66 = arith.constant 0 : index
    %175 = vector.load %arg4[%c2_64, %c0_65, %c0_66] : memref<9x32x64xbf16, #tpu.memory_space<vmem>>, vector<1x32x64xbf16>
    %176 = vector.shape_cast %175 : vector<1x32x64xbf16> to vector<32x64xbf16>
    %cst_67 = arith.constant dense<0.000000e+00> : vector<8x64xf32>
    %177 = tpu.matmul %174, %176, %cst_67 {dimension_numbers = #tpu.dot_dimension_numbers<[1], [0], [0], [1], [0, 0, 1, 1], [], []>} : vector<8x32xbf16>, vector<32x64xbf16>, vector<8x64xf32> -> vector<8x64xf32>
    %178 = arith.addf %173, %177 : vector<8x64xf32>
    %179 = vector.extract_strided_slice %162 {offsets = [3, 0], sizes = [8, 32], strides = [1, 1]} : vector<16x32xbf16> to vector<8x32xbf16>
    %c3_68 = arith.constant 3 : index
    %c0_69 = arith.constant 0 : index
    %c0_70 = arith.constant 0 : index
    %180 = vector.load %arg4[%c3_68, %c0_69, %c0_70] : memref<9x32x64xbf16, #tpu.memory_space<vmem>>, vector<1x32x64xbf16>
    %181 = vector.shape_cast %180 : vector<1x32x64xbf16> to vector<32x64xbf16>
    %cst_71 = arith.constant dense<0.000000e+00> : vector<8x64xf32>
    %182 = tpu.matmul %179, %181, %cst_71 {dimension_numbers = #tpu.dot_dimension_numbers<[1], [0], [0], [1], [0, 0, 1, 1], [], []>} : vector<8x32xbf16>, vector<32x64xbf16>, vector<8x64xf32> -> vector<8x64xf32>
    %183 = arith.addf %178, %182 : vector<8x64xf32>
    %184 = vector.extract_strided_slice %162 {offsets = [4, 0], sizes = [8, 32], strides = [1, 1]} : vector<16x32xbf16> to vector<8x32xbf16>
    %c4_72 = arith.constant 4 : index
    %c0_73 = arith.constant 0 : index
    %c0_74 = arith.constant 0 : index
    %185 = vector.load %arg4[%c4_72, %c0_73, %c0_74] : memref<9x32x64xbf16, #tpu.memory_space<vmem>>, vector<1x32x64xbf16>
    %186 = vector.shape_cast %185 : vector<1x32x64xbf16> to vector<32x64xbf16>
    %cst_75 = arith.constant dense<0.000000e+00> : vector<8x64xf32>
    %187 = tpu.matmul %184, %186, %cst_75 {dimension_numbers = #tpu.dot_dimension_numbers<[1], [0], [0], [1], [0, 0, 1, 1], [], []>} : vector<8x32xbf16>, vector<32x64xbf16>, vector<8x64xf32> -> vector<8x64xf32>
    %188 = arith.addf %183, %187 : vector<8x64xf32>
    %189 = vector.extract_strided_slice %162 {offsets = [5, 0], sizes = [8, 32], strides = [1, 1]} : vector<16x32xbf16> to vector<8x32xbf16>
    %c5_76 = arith.constant 5 : index
    %c0_77 = arith.constant 0 : index
    %c0_78 = arith.constant 0 : index
    %190 = vector.load %arg4[%c5_76, %c0_77, %c0_78] : memref<9x32x64xbf16, #tpu.memory_space<vmem>>, vector<1x32x64xbf16>
    %191 = vector.shape_cast %190 : vector<1x32x64xbf16> to vector<32x64xbf16>
    %cst_79 = arith.constant dense<0.000000e+00> : vector<8x64xf32>
    %192 = tpu.matmul %189, %191, %cst_79 {dimension_numbers = #tpu.dot_dimension_numbers<[1], [0], [0], [1], [0, 0, 1, 1], [], []>} : vector<8x32xbf16>, vector<32x64xbf16>, vector<8x64xf32> -> vector<8x64xf32>
    %193 = arith.addf %188, %192 : vector<8x64xf32>
    %194 = vector.extract_strided_slice %162 {offsets = [6, 0], sizes = [8, 32], strides = [1, 1]} : vector<16x32xbf16> to vector<8x32xbf16>
    %c6_80 = arith.constant 6 : index
    %c0_81 = arith.constant 0 : index
    %c0_82 = arith.constant 0 : index
    %195 = vector.load %arg4[%c6_80, %c0_81, %c0_82] : memref<9x32x64xbf16, #tpu.memory_space<vmem>>, vector<1x32x64xbf16>
    %196 = vector.shape_cast %195 : vector<1x32x64xbf16> to vector<32x64xbf16>
    %cst_83 = arith.constant dense<0.000000e+00> : vector<8x64xf32>
    %197 = tpu.matmul %194, %196, %cst_83 {dimension_numbers = #tpu.dot_dimension_numbers<[1], [0], [0], [1], [0, 0, 1, 1], [], []>} : vector<8x32xbf16>, vector<32x64xbf16>, vector<8x64xf32> -> vector<8x64xf32>
    %198 = arith.addf %193, %197 : vector<8x64xf32>
    %199 = vector.extract_strided_slice %162 {offsets = [7, 0], sizes = [8, 32], strides = [1, 1]} : vector<16x32xbf16> to vector<8x32xbf16>
    %c7_84 = arith.constant 7 : index
    %c0_85 = arith.constant 0 : index
    %c0_86 = arith.constant 0 : index
    %200 = vector.load %arg4[%c7_84, %c0_85, %c0_86] : memref<9x32x64xbf16, #tpu.memory_space<vmem>>, vector<1x32x64xbf16>
    %201 = vector.shape_cast %200 : vector<1x32x64xbf16> to vector<32x64xbf16>
    %cst_87 = arith.constant dense<0.000000e+00> : vector<8x64xf32>
    %202 = tpu.matmul %199, %201, %cst_87 {dimension_numbers = #tpu.dot_dimension_numbers<[1], [0], [0], [1], [0, 0, 1, 1], [], []>} : vector<8x32xbf16>, vector<32x64xbf16>, vector<8x64xf32> -> vector<8x64xf32>
    %203 = arith.addf %198, %202 : vector<8x64xf32>
    %204 = vector.extract_strided_slice %162 {offsets = [8, 0], sizes = [8, 32], strides = [1, 1]} : vector<16x32xbf16> to vector<8x32xbf16>
    %c8_88 = arith.constant 8 : index
    %c0_89 = arith.constant 0 : index
    %c0_90 = arith.constant 0 : index
    %205 = vector.load %arg4[%c8_88, %c0_89, %c0_90] : memref<9x32x64xbf16, #tpu.memory_space<vmem>>, vector<1x32x64xbf16>
    %206 = vector.shape_cast %205 : vector<1x32x64xbf16> to vector<32x64xbf16>
    %cst_91 = arith.constant dense<0.000000e+00> : vector<8x64xf32>
    %207 = tpu.matmul %204, %206, %cst_91 {dimension_numbers = #tpu.dot_dimension_numbers<[1], [0], [0], [1], [0, 0, 1, 1], [], []>} : vector<8x32xbf16>, vector<32x64xbf16>, vector<8x64xf32> -> vector<8x64xf32>
    %208 = arith.addf %203, %207 : vector<8x64xf32>
    %209 = vector.extract_strided_slice %159 {offsets = [8, 0], sizes = [8, 32], strides = [1, 1]} : vector<16x32xbf16> to vector<8x32xbf16>
    %210 = tpu.concatenate %160, %209, %160 in 0 : vector<4x32xbf16>, vector<8x32xbf16>, vector<4x32xbf16> -> vector<16x32xbf16>
    %cst_92 = arith.constant 0.000000e+00 : f32
    %211 = vector.broadcast %cst_92 : f32 to vector<8x64xf32>
    %212 = vector.extract_strided_slice %210 {offsets = [0, 0], sizes = [8, 32], strides = [1, 1]} : vector<16x32xbf16> to vector<8x32xbf16>
    %c0_93 = arith.constant 0 : index
    %c0_94 = arith.constant 0 : index
    %c0_95 = arith.constant 0 : index
    %213 = vector.load %arg4[%c0_93, %c0_94, %c0_95] : memref<9x32x64xbf16, #tpu.memory_space<vmem>>, vector<1x32x64xbf16>
    %214 = vector.shape_cast %213 : vector<1x32x64xbf16> to vector<32x64xbf16>
    %cst_96 = arith.constant dense<0.000000e+00> : vector<8x64xf32>
    %215 = tpu.matmul %212, %214, %cst_96 {dimension_numbers = #tpu.dot_dimension_numbers<[1], [0], [0], [1], [0, 0, 1, 1], [], []>} : vector<8x32xbf16>, vector<32x64xbf16>, vector<8x64xf32> -> vector<8x64xf32>
    %216 = arith.addf %211, %215 : vector<8x64xf32>
    %217 = vector.extract_strided_slice %210 {offsets = [1, 0], sizes = [8, 32], strides = [1, 1]} : vector<16x32xbf16> to vector<8x32xbf16>
    %c1_97 = arith.constant 1 : index
    %c0_98 = arith.constant 0 : index
    %c0_99 = arith.constant 0 : index
    %218 = vector.load %arg4[%c1_97, %c0_98, %c0_99] : memref<9x32x64xbf16, #tpu.memory_space<vmem>>, vector<1x32x64xbf16>
    %219 = vector.shape_cast %218 : vector<1x32x64xbf16> to vector<32x64xbf16>
    %cst_100 = arith.constant dense<0.000000e+00> : vector<8x64xf32>
    %220 = tpu.matmul %217, %219, %cst_100 {dimension_numbers = #tpu.dot_dimension_numbers<[1], [0], [0], [1], [0, 0, 1, 1], [], []>} : vector<8x32xbf16>, vector<32x64xbf16>, vector<8x64xf32> -> vector<8x64xf32>
    %221 = arith.addf %216, %220 : vector<8x64xf32>
    %222 = vector.extract_strided_slice %210 {offsets = [2, 0], sizes = [8, 32], strides = [1, 1]} : vector<16x32xbf16> to vector<8x32xbf16>
    %c2_101 = arith.constant 2 : index
    %c0_102 = arith.constant 0 : index
    %c0_103 = arith.constant 0 : index
    %223 = vector.load %arg4[%c2_101, %c0_102, %c0_103] : memref<9x32x64xbf16, #tpu.memory_space<vmem>>, vector<1x32x64xbf16>
    %224 = vector.shape_cast %223 : vector<1x32x64xbf16> to vector<32x64xbf16>
    %cst_104 = arith.constant dense<0.000000e+00> : vector<8x64xf32>
    %225 = tpu.matmul %222, %224, %cst_104 {dimension_numbers = #tpu.dot_dimension_numbers<[1], [0], [0], [1], [0, 0, 1, 1], [], []>} : vector<8x32xbf16>, vector<32x64xbf16>, vector<8x64xf32> -> vector<8x64xf32>
    %226 = arith.addf %221, %225 : vector<8x64xf32>
    %227 = vector.extract_strided_slice %210 {offsets = [3, 0], sizes = [8, 32], strides = [1, 1]} : vector<16x32xbf16> to vector<8x32xbf16>
    %c3_105 = arith.constant 3 : index
    %c0_106 = arith.constant 0 : index
    %c0_107 = arith.constant 0 : index
    %228 = vector.load %arg4[%c3_105, %c0_106, %c0_107] : memref<9x32x64xbf16, #tpu.memory_space<vmem>>, vector<1x32x64xbf16>
    %229 = vector.shape_cast %228 : vector<1x32x64xbf16> to vector<32x64xbf16>
    %cst_108 = arith.constant dense<0.000000e+00> : vector<8x64xf32>
    %230 = tpu.matmul %227, %229, %cst_108 {dimension_numbers = #tpu.dot_dimension_numbers<[1], [0], [0], [1], [0, 0, 1, 1], [], []>} : vector<8x32xbf16>, vector<32x64xbf16>, vector<8x64xf32> -> vector<8x64xf32>
    %231 = arith.addf %226, %230 : vector<8x64xf32>
    %232 = vector.extract_strided_slice %210 {offsets = [4, 0], sizes = [8, 32], strides = [1, 1]} : vector<16x32xbf16> to vector<8x32xbf16>
    %c4_109 = arith.constant 4 : index
    %c0_110 = arith.constant 0 : index
    %c0_111 = arith.constant 0 : index
    %233 = vector.load %arg4[%c4_109, %c0_110, %c0_111] : memref<9x32x64xbf16, #tpu.memory_space<vmem>>, vector<1x32x64xbf16>
    %234 = vector.shape_cast %233 : vector<1x32x64xbf16> to vector<32x64xbf16>
    %cst_112 = arith.constant dense<0.000000e+00> : vector<8x64xf32>
    %235 = tpu.matmul %232, %234, %cst_112 {dimension_numbers = #tpu.dot_dimension_numbers<[1], [0], [0], [1], [0, 0, 1, 1], [], []>} : vector<8x32xbf16>, vector<32x64xbf16>, vector<8x64xf32> -> vector<8x64xf32>
    %236 = arith.addf %231, %235 : vector<8x64xf32>
    %237 = vector.extract_strided_slice %210 {offsets = [5, 0], sizes = [8, 32], strides = [1, 1]} : vector<16x32xbf16> to vector<8x32xbf16>
    %c5_113 = arith.constant 5 : index
    %c0_114 = arith.constant 0 : index
    %c0_115 = arith.constant 0 : index
    %238 = vector.load %arg4[%c5_113, %c0_114, %c0_115] : memref<9x32x64xbf16, #tpu.memory_space<vmem>>, vector<1x32x64xbf16>
    %239 = vector.shape_cast %238 : vector<1x32x64xbf16> to vector<32x64xbf16>
    %cst_116 = arith.constant dense<0.000000e+00> : vector<8x64xf32>
    %240 = tpu.matmul %237, %239, %cst_116 {dimension_numbers = #tpu.dot_dimension_numbers<[1], [0], [0], [1], [0, 0, 1, 1], [], []>} : vector<8x32xbf16>, vector<32x64xbf16>, vector<8x64xf32> -> vector<8x64xf32>
    %241 = arith.addf %236, %240 : vector<8x64xf32>
    %242 = vector.extract_strided_slice %210 {offsets = [6, 0], sizes = [8, 32], strides = [1, 1]} : vector<16x32xbf16> to vector<8x32xbf16>
    %c6_117 = arith.constant 6 : index
    %c0_118 = arith.constant 0 : index
    %c0_119 = arith.constant 0 : index
    %243 = vector.load %arg4[%c6_117, %c0_118, %c0_119] : memref<9x32x64xbf16, #tpu.memory_space<vmem>>, vector<1x32x64xbf16>
    %244 = vector.shape_cast %243 : vector<1x32x64xbf16> to vector<32x64xbf16>
    %cst_120 = arith.constant dense<0.000000e+00> : vector<8x64xf32>
    %245 = tpu.matmul %242, %244, %cst_120 {dimension_numbers = #tpu.dot_dimension_numbers<[1], [0], [0], [1], [0, 0, 1, 1], [], []>} : vector<8x32xbf16>, vector<32x64xbf16>, vector<8x64xf32> -> vector<8x64xf32>
    %246 = arith.addf %241, %245 : vector<8x64xf32>
    %247 = vector.extract_strided_slice %210 {offsets = [7, 0], sizes = [8, 32], strides = [1, 1]} : vector<16x32xbf16> to vector<8x32xbf16>
    %c7_121 = arith.constant 7 : index
    %c0_122 = arith.constant 0 : index
    %c0_123 = arith.constant 0 : index
    %248 = vector.load %arg4[%c7_121, %c0_122, %c0_123] : memref<9x32x64xbf16, #tpu.memory_space<vmem>>, vector<1x32x64xbf16>
    %249 = vector.shape_cast %248 : vector<1x32x64xbf16> to vector<32x64xbf16>
    %cst_124 = arith.constant dense<0.000000e+00> : vector<8x64xf32>
    %250 = tpu.matmul %247, %249, %cst_124 {dimension_numbers = #tpu.dot_dimension_numbers<[1], [0], [0], [1], [0, 0, 1, 1], [], []>} : vector<8x32xbf16>, vector<32x64xbf16>, vector<8x64xf32> -> vector<8x64xf32>
    %251 = arith.addf %246, %250 : vector<8x64xf32>
    %252 = vector.extract_strided_slice %210 {offsets = [8, 0], sizes = [8, 32], strides = [1, 1]} : vector<16x32xbf16> to vector<8x32xbf16>
    %c8_125 = arith.constant 8 : index
    %c0_126 = arith.constant 0 : index
    %c0_127 = arith.constant 0 : index
    %253 = vector.load %arg4[%c8_125, %c0_126, %c0_127] : memref<9x32x64xbf16, #tpu.memory_space<vmem>>, vector<1x32x64xbf16>
    %254 = vector.shape_cast %253 : vector<1x32x64xbf16> to vector<32x64xbf16>
    %cst_128 = arith.constant dense<0.000000e+00> : vector<8x64xf32>
    %255 = tpu.matmul %252, %254, %cst_128 {dimension_numbers = #tpu.dot_dimension_numbers<[1], [0], [0], [1], [0, 0, 1, 1], [], []>} : vector<8x32xbf16>, vector<32x64xbf16>, vector<8x64xf32> -> vector<8x64xf32>
    %256 = arith.addf %251, %255 : vector<8x64xf32>
    %257 = tpu.concatenate %208, %256 in 0 : vector<8x64xf32>, vector<8x64xf32> -> vector<16x64xf32>
    %258 = vector.broadcast %7 : vector<1x64xf32> to vector<16x64xf32>
    %259 = arith.addf %257, %258 : vector<16x64xf32>
    %cst_129 = arith.constant 0.000000e+00 : f32
    %260 = vector.broadcast %cst_129 : f32 to vector<16x64xf32>
    %261 = arith.maximumf %259, %260 : vector<16x64xf32>
    %262 = arith.truncf %261 : vector<16x64xf32> to vector<16x64xbf16>
    %c0_130 = arith.constant 0 : index
    %c0_131 = arith.constant 0 : index
    %263 = vector.load %arg5[%c0_130, %c0_131] : memref<64x32xbf16, #tpu.memory_space<vmem>>, vector<64x32xbf16>
    %cst_132 = arith.constant dense<0.000000e+00> : vector<16x32xf32>
    %264 = tpu.matmul %262, %263, %cst_132 {dimension_numbers = #tpu.dot_dimension_numbers<[1], [0], [0], [1], [0, 0, 1, 1], [], []>} : vector<16x64xbf16>, vector<64x32xbf16>, vector<16x32xf32> -> vector<16x32xf32>
    %265 = vector.broadcast %8 : vector<1x32xf32> to vector<16x32xf32>
    %266 = arith.addf %264, %265 : vector<16x32xf32>
    %267 = arith.addf %266, %158 : vector<16x32xf32>
    %cst_133 = arith.constant dense<0.000000e+00> : vector<16xf32>
    %268 = vector.multi_reduction <add>, %267, %cst_133 [1] : vector<16x32xf32> to vector<16xf32>
    %269 = vector.shape_cast %268 : vector<16xf32> to vector<16x1xf32>
    %cst_134 = arith.constant 3.200000e+01 : f32
    %270 = vector.broadcast %cst_134 : f32 to vector<16x1xf32>
    %271 = arith.divf %269, %270 : vector<16x1xf32>
    %272 = vector.broadcast %271 : vector<16x1xf32> to vector<16x32xf32>
    %273 = arith.subf %267, %272 : vector<16x32xf32>
    %274 = arith.mulf %273, %273 : vector<16x32xf32>
    %cst_135 = arith.constant dense<0.000000e+00> : vector<16xf32>
    %275 = vector.multi_reduction <add>, %274, %cst_135 [1] : vector<16x32xf32> to vector<16xf32>
    %276 = vector.shape_cast %275 : vector<16xf32> to vector<16x1xf32>
    %cst_136 = arith.constant 3.200000e+01 : f32
    %277 = vector.broadcast %cst_136 : f32 to vector<16x1xf32>
    %278 = arith.divf %276, %277 : vector<16x1xf32>
    %279 = vector.broadcast %271 : vector<16x1xf32> to vector<16x32xf32>
    %280 = arith.subf %267, %279 : vector<16x32xf32>
    %cst_137 = arith.constant 9.99999974E-6 : f32
    %281 = vector.broadcast %cst_137 : f32 to vector<16x1xf32>
    %282 = arith.addf %278, %281 : vector<16x1xf32>
    %283 = math.rsqrt %282 : vector<16x1xf32>
    %284 = vector.broadcast %283 : vector<16x1xf32> to vector<16x32xf32>
    %285 = arith.mulf %280, %284 : vector<16x32xf32>
    %286 = vector.broadcast %9 : vector<1x32xf32> to vector<16x32xf32>
    %287 = arith.mulf %285, %286 : vector<16x32xf32>
    %288 = vector.broadcast %10 : vector<1x32xf32> to vector<16x32xf32>
    %289 = arith.addf %287, %288 : vector<16x32xf32>
    %290 = vector.broadcast %2 : vector<16x1xf32> to vector<16x32xf32>
    %291 = arith.mulf %289, %290 : vector<16x32xf32>
    %cst_138 = arith.constant 0.000000e+00 : f32
    %292 = vector.broadcast %cst_138 : f32 to vector<16x96xf32>
    %293 = tpu.concatenate %291, %292 in 1 : vector<16x32xf32>, vector<16x96xf32> -> vector<16x128xf32>
    %c0_139 = arith.constant 0 : index
    %c0_140 = arith.constant 0 : index
    %294 = vector.load %arg7[%c0_139, %c0_140] : memref<16x128xf32, #tpu.memory_space<vmem>>, vector<16x128xf32>
    tpu.vector_store %arg7[%c0_139, %c0_140], %293 {strides = array<i32>} : memref<16x128xf32, #tpu.memory_space<vmem>>, vector<16x128xf32>,
    %295 = tpu.concatenate %41, %97, %68, %124 in 0 : vector<8x8xf32>, vector<8x8xf32>, vector<8x8xf32>, vector<8x8xf32> -> vector<32x8xf32>
    %cst_141 = arith.constant 0.000000e+00 : f32
    %296 = vector.broadcast %cst_141 : f32 to vector<32x120xf32>
    %297 = tpu.concatenate %295, %296 in 1 : vector<32x8xf32>, vector<32x120xf32> -> vector<32x128xf32>
    %c0_142 = arith.constant 0 : index
    %c0_143 = arith.constant 0 : index
    %298 = vector.load %arg8[%c0_142, %c0_143] : memref<32x128xf32, #tpu.memory_space<vmem>>, vector<32x128xf32>
    tpu.vector_store %arg8[%c0_142, %c0_143], %297 {strides = array<i32>} : memref<32x128xf32, #tpu.memory_space<vmem>>, vector<32x128xf32>,
    return
  }
}

</mosaic_0001>

<bundles_post_ra>
// kernel: tpu_custom_call.1
= control target key start
LH: loop header
LB: loop body
LE: loop exit
PB: predicated region body
PF: predicated region fallthrough
CT: control target
= control target key end

     0   :  { %14 = vsyncpa [#allocation3], 0  ;;  %s3014_s0 = inlined_call_operand.vmem [shape: f32[16,32], index: 0, kind: input, shape index: {}]   ;;  %s3015_s1 = inlined_call_operand.vmem [shape: f32[16,9], index: 1, kind: input, shape index: {}]   ;;  %s3016_s2 = inlined_call_operand.vmem [shape: bf16[32,96], index: 2, kind: input, shape index: {}]   ;;  %s3017_s3 = inlined_call_operand.hbm [shape: bf16[32,32], index: 3, kind: input, shape index: {}]   ;;  %s3018_s4 = inlined_call_operand.hbm [shape: bf16[9,32,64], index: 4, kind: input, shape index: {}]   ;;  %s3019_s5 = inlined_call_operand.vmem [shape: bf16[64,32], index: 5, kind: input, shape index: {}]   ;;  %s3020_s6 = inlined_call_operand.vmem [shape: f32[8,128], index: 6, kind: input, shape index: {}]   ;;  %s3021_s7 = inlined_call_operand.hbm [shape: f32[16,128], index: 7, kind: output, shape index: {0}]   ;;  %s3022_s8 = inlined_call_operand.hbm [shape: f32[32,128], index: 8, kind: output, shape index: {1}]  }
   0x1   :  { %15 = vsyncpa [#allocation6], 0 }
   0x2   :  { %16 = vsyncpa [#allocation4], 0 }
   0x3   :  { %17 = vsyncpa [#allocation9], 0  ;;  %s2550_s27 = smov [#allocation2]  }
   0x4   :  { %s29_s28 = sshll.u32 %s2550_s27, 4  ;;  %s30_s28 = int_to_ptr.vmem [resolvable:$true] %s29_s28 }
   0x5   :  { %s2470_s29 = scalar_lea.vmem %s30_s28, 256  ;;  %p2475_p1 = scmp.lt.s32.totalorder %s30_s28, %s30_s28 }
   0x6   :  { %p2471_p0 = scmp.ne.s32.totalorder %s30_s28, %s2470_s29  ;;  %p2476_p2 = scmp.lt.s32.totalorder %s2470_s29, %s2470_s29 }
   0x8   :  { %p2477_p3 = por %p2476_p2, %p2475_p1 }
   0xa   :  { %p2478_p4 = pnand %p2477_p3, %p2471_p0 }
   0xc   :  { %2481 = shalt.err (!%p2478_p4)
}
   0xd   :  { %s2551_s30 = smov 64   ;;  %s2552_s9 = smov 4  }
   0xe   :  { %35 = dma.hbm_to_vmem [thread:$0]  %s3017_s3, 256, %s30_s28, [#allocation3], %s2551_s30, %s2551_s30, %s2552_s9  }
   0xf   :  { %s2553_s12 = smov [#allocation5]  }
  0x10   :  { %s41_s13 = sshll.u32 %s2553_s12, 4  ;;  %s42_s13 = int_to_ptr.vmem [resolvable:$true] %s41_s13 }
  0x11   :  { %s2490_s14 = scalar_lea.vmem %s42_s13, 2304  ;;  %p2495_p6 = scmp.lt.s32.totalorder %s42_s13, %s42_s13 }
  0x12   :  { %p2491_p5 = scmp.ne.s32.totalorder %s42_s13, %s2490_s14  ;;  %p2496_p7 = scmp.lt.s32.totalorder %s2490_s14, %s2490_s14 }
  0x14   :  { %p2497_p8 = por %p2496_p7, %p2495_p6 }
  0x16   :  { %p2498_p9 = pnand %p2497_p8, %p2491_p5 }
  0x18   :  { %2501 = shalt.err (!%p2498_p9)
}
  0x19   :  { %47 = dma.hbm_to_vmem [thread:$0]  %s3018_s4, 2304, %s42_s13, [#allocation6], %s2551_s30, %s2551_s30, %s2552_s9  }
  0x1a   :  { %2542 = dma.done.wait [#allocation3], 256  }
  0x1b   :  { %2543 = vsyncadd [#allocation3], 4294967040 }
  0x1c   :  { %2544 = dma.done.wait [#allocation6], 2304  }
  0x1d   :  { %2545 = vsyncadd [#allocation6], 4294964992  ;;  %v2554_v0 = vmov 0.0   ;;  %vm2555_vm0 = vmmov 0   ;;  %v2412_v1 = vld [vmem:[%s3016_s2 + $0x8] sm:$0xff]   ;;  %v2413_v2 = vld [vmem:[%s3016_s2] sm:$0xff]  }
  0x1e   :  { %2159 = vmatprep.subr.bf16.mxu0 %v2554_v0  ;;  %2163 = vmatprep.mubr.msk.bf16.mxu0 %vm2555_vm0, %v2554_v0  ;;  %v2635_v3 = vld [vmem:[%s3014_s0] sm:$0xff]  ;;  %v2640_v4 = vld [vmem:[%s3014_s0 + $0x8] sm:$0xff]  ;;  %vm92_vm1 = vcmask 261120   ;;  %s2556_s0 = smov 112   ;;  %s2557_s24 = smov 96   ;;  %vm146_vm2 = vcmask 130048  }
  0x1f   :  { %2167 = vmatprep.subr.bf16.mxu1 %v2554_v0  ;;  %2169 = vmatprep.mubr.msk.bf16.mxu1 %vm2555_vm0, %v2554_v0  ;;  %v61_v5 = vpack.c.bf16 %v2640_v4, %v2635_v3  ;;  %v2007_v6 = vld [vmem:[%s3020_s6] ss:$0 sm:$0xff]  ;;  %s2558_s25 = smov 80   ;;  %vm195_vm4 = vcmask 64512   ;;  %s2559_s28 = smov 48   ;;  %vm213_vm5 = vcmask 1043456  }
  0x20   :  { %2160 = vmatpush3.bf16.msra.mxu0 %v2412_v1  ;;  %v2668_v19 = vld [vmem:[%s3015_s1] sm:$0xff]  ;;  %v2415_v58 = vld [vmem:[#allocation2 + $0x8] sm:$0xff]   ;;  %vm841_vm7 = vcmask 1041408   ;;  %vm845_vm8 = vcmask 1045504   ;;  %vm1874_vm9 = vcmask 523264   ;;  %s2561_s2 = smov [#allocation8]  }
  0x21   :  { %2161 = vmatprep.subr.bf16.mxu0 %v2554_v0  ;;  %vm193_vm3 = vcmp.gt.f32.partialorder %v2668_v19, 0.5  ;;  %v2697_v57 = vld [vmem:[#allocation2] sm:$0xff]   ;;  %s1990_s23 = sshll.u32 %s2561_s2, 4  ;;  %s1991_s23 = int_to_ptr.vmem [resolvable:$true] %s1990_s23 }
  0x22   :  { %p2507_p11 = scmp.lt.s32.totalorder %s1991_s23, %s1991_s23 }
  0x24   :  { %2162 = vmatpush3.bf16.msra.mxu0 %v2413_v2 }
  0x25   :  { %2173 = vmatprep.subr.bf16.mxu0 %v2554_v0 }
  0x27   :  { %2164 = vmatmul.mubr.msk.bf16.vlgmr.msra.gmra.mxu0 %vm92_vm1, %v61_v5 }
  0x28   :  { %2175 = vmatprep.mubr.msk.bf16.mxu0 %vm2555_vm0, %v2554_v0 }
  0xe7   :  { %v130_v7 = vpop.f32.mrf.mxu0 }
  0xe8   :  { %v131_v8 = vadd.f32 %v2007_v6, %v130_v7 }
  0xe9   :  { %v2165_v9 = vpop.f32.mrf.mxu0 }
  0xea   :  { %v142_v10 = vpack.c.bf16 %v131_v8, %v131_v8 }
  0xeb   :  { %v133_v11 = vpop.f32.mrf.mxu0 }
  0xec   :  { %v134_v12 = vadd.f32 %v2007_v6, %v133_v11  ;;  %258 = vrot.lane.b32.xlu1 %v142_v10, %s2556_s0  ;;  %144 = vrot.lane.b32.xlu0 %v142_v10, %s2557_s24 }
  0xed   :  { %v2166_v13 = vpop.f32.mrf.mxu0 }
  0xee   :  { %v2676_v42 = vpack.c.bf16 %v134_v12, %v134_v12 }
  0xf0   :  { %260 = vrot.lane.b32.xlu0 %v142_v10, %s2558_s25 }
 0x15e   :  { %v145_v14 = vpop.permute.xlu0 %144  ;;  %v259_v18 = vpop.permute.xlu1 %258 }
 0x15f   :  { %v151_v15 = vsel %vm146_vm2, %v145_v14, 0 }
 0x160   :  { %2168 = vmatpush3.bf16.xpose.msra.mxu1 %v151_v15 }
 0x161   :  { %2179 = vmatprep.subr.bf16.mxu1 %v2554_v0 }
 0x162   :  { %v261_v16 = vpop.permute.xlu0 %260 }
 0x163   :  { %v266_v17 = vsel %vm146_vm2, %v261_v16, 0 }
 0x167   :  { %2170 = vmatmul.mubr.msk.bf16.vlgmr.msra.gmra.mxu1 %vm146_vm2, %v142_v10 }
 0x168   :  { %2180 = vmatpush3.bf16.xpose.msra.mxu1 %v266_v17  ;;  %2181 = vmatprep.mubr.msk.bf16.mxu1 %vm2555_vm0, %v2554_v0 }
 0x169   :  { %2191 = vmatprep.subr.bf16.mxu1 %v2554_v0 }
 0x16f   :  { %2182 = vmatmul.mubr.msk.bf16.vlgmr.msra.gmra.mxu1 %vm146_vm2, %v259_v18 }
 0x170   :  { %2193 = vmatprep.mubr.msk.bf16.mxu1 %vm2555_vm0, %v2554_v0  ;;  %2192 = vmatpush3.bf16.msra.mxu1 %v2415_v58 }
 0x171   :  { %2203 = vmatprep.subr.bf16.mxu1 %v2554_v0 }
 0x227   :  { %v187_v20 = vpop.f32.mrf.mxu1 }
 0x228   :  { %v194_v21 = vsel %vm193_vm3, -1e+30, %v187_v20 }
 0x229   :  { %v2171_v22 = vpop.f32.mrf.mxu1  ;;  %v196_v23 = vsel %vm195_vm4, %v194_v21, -inf }
 0x22a   :  { %197 = vmax.xlane.f32.xlu1 %v196_v23 }
 0x22b   :  { %v190_v24 = vpop.f32.mrf.mxu1 }
 0x22d   :  { %v2172_v25 = vpop.f32.mrf.mxu1 }
 0x22f   :  { %v302_v26 = vpop.f32.mrf.mxu1 }
 0x230   :  { %v308_v27 = vsel %vm193_vm3, -1e+30, %v302_v26 }
 0x231   :  { %v2183_v28 = vpop.f32.mrf.mxu1  ;;  %v309_v29 = vsel %vm195_vm4, %v308_v27, -inf }
 0x232   :  { %310 = vmax.xlane.f32.xlu0 %v309_v29 }
 0x233   :  { %v305_v30 = vpop.f32.mrf.mxu1 }
 0x235   :  { %v2184_v31 = vpop.f32.mrf.mxu1 }
 0x2b3   :  { %v198_v32 = vpop.xlane.xlu1 %197 }
 0x2b4   :  { %v199_v33 = vsub.f32 %v194_v21, %v198_v32  ;;  %v2723_v21 = vld [vmem:[%s3015_s1 + $0x8] sm:$0xff] }
 0x2b5   :  { %vm518_vm6 = vcmp.gt.f32.partialorder %v2723_v21, 0.5 }
 0x2b6   :  { %v200_v34 = vmul.f32 1.442695, %v199_v33 }
 0x2b8   :  { %2438 = vpow2.f32 %v200_v34 }
 0x2bb   :  { %v311_v35 = vpop.xlane.xlu0 %310 }
 0x2bc   :  { %v312_v36 = vsub.f32 %v308_v27, %v311_v35 }
 0x2be   :  { %v313_v37 = vmul.f32 1.442695, %v312_v36  ;;  %v2733_v36 = vld [vmem:[%s3020_s6 + $0x1] ss:$0 sm:$0xff] }
 0x2c0   :  { %2440 = vpow2.f32 %v313_v37 }
 0x2c5   :  { %v2439_v38 = vpop.eup %2438 }
 0x2c6   :  { %v202_v39 = vsel %vm195_vm4, %v2439_v38, 0.0 }
 0x2c7   :  { %203 = vadd.xlane.f32.xlu0 %v202_v39 }
 0x2cd   :  { %v2441_v40 = vpop.eup %2440 }
 0x2ce   :  { %v315_v41 = vsel %vm195_vm4, %v2441_v40, 0.0 }
 0x2cf   :  { %316 = vadd.xlane.f32.xlu1 %v315_v41 }
 0x2dd   :  { %208 = vrot.lane.b32.xlu0 %v142_v10, %s2551_s30 }
 0x2e0   :  { %321 = vrot.lane.b32.xlu1 %v142_v10, %s2559_s28 }
 0x2e1   :  { %583 = vrot.lane.b32.xlu0 %v2676_v42, %s2558_s25 }
 0x2e4   :  { %470 = vrot.lane.b32.xlu1 %v2676_v42, %s2557_s24 }
 0x2e8   :  { %581 = vrot.lane.b32.xlu1 %v2676_v42, %s2556_s0  ;;  %s2502_s0 = scalar_lea.vmem %s1991_s23, 512 }
 0x2e9   :  { %p2503_p10 = scmp.ne.s32.totalorder %s1991_s23, %s2502_s0  ;;  %p2508_p12 = scmp.lt.s32.totalorder %s2502_s0, %s2502_s0 }
 0x2eb   :  { %p2509_p13 = por %p2508_p12, %p2507_p11 }
 0x2ed   :  { %p2510_p0 = pnand %p2509_p13, %p2503_p10 }
 0x350   :  { %v204_v43 = vpop.xlane.xlu0 %203 }
 0x351   :  { %2442 = vrcp.f32 %v204_v43 }
 0x354   :  { %v209_v44 = vpop.permute.xlu0 %208 }
 0x355   :  { %v215_v45 = vsel %vm213_vm5, %v209_v44, 0 }
 0x356   :  { %2174 = vmatpush3.bf16.msra.mxu0 %v215_v45 }
 0x357   :  { %2185 = vmatprep.subr.bf16.mxu0 %v2554_v0 }
 0x358   :  { %v317_v46 = vpop.xlane.xlu1 %316  ;;  %v584_v10 = vpop.permute.xlu0 %583 }
 0x359   :  { %2444 = vrcp.f32 %v317_v46  ;;  %v589_v11 = vsel %vm146_vm2, %v584_v10, 0 }
 0x35c   :  { %v322_v49 = vpop.permute.xlu1 %321 }
 0x35d   :  { %v327_v52 = vsel %vm213_vm5, %v322_v49, 0 }
 0x35e   :  { %v2443_v47 = vpop.eup %2442 }
 0x35f   :  { %v206_v48 = vmul.f32 %v2443_v47, %v2439_v38 }
 0x360   :  { %v471_v1 = vpop.permute.xlu1 %470 }
 0x361   :  { %v207_v50 = vpack.c.bf16 %v206_v48, %v206_v48  ;;  %v1965_v51 = vsel %vm195_vm4, %v206_v48, 0.0  ;;  %v476_v7 = vsel %vm146_vm2, %v471_v1, 0 }
 0x362   :  { %1969 = vst [vmem:[#allocation8] sm:$0xff] %v1965_v51 }
 0x363   :  { %2176 = vmatmul.mubr.msk.bf16.vlgmr.msra.gmra.mxu0 %vm195_vm4, %v207_v50 }
 0x364   :  { %2186 = vmatpush3.bf16.msra.mxu0 %v327_v52  ;;  %2187 = vmatprep.mubr.msk.bf16.mxu0 %vm2555_vm0, %v2554_v0  ;;  %v582_v12 = vpop.permute.xlu1 %581 }
 0x365   :  { %2197 = vmatprep.subr.bf16.mxu0 %v2554_v0 }
 0x366   :  { %v2445_v53 = vpop.eup %2444 }
 0x367   :  { %v319_v54 = vmul.f32 %v2445_v53, %v2441_v40  ;;  %v2560_v40 = vmov 8  }
 0x368   :  { %2410 = vset.pattern.permute.xlu1 %v2560_v40  ;;  %2411 = vset.pattern.permute.xlu0 %v2560_v40 }
 0x369   :  { %v320_v55 = vpack.c.bf16 %v319_v54, %v319_v54  ;;  %v1967_v56 = vsel %vm195_vm4, %v319_v54, 0.0 }
 0x36a   :  { %1971 = vst [vmem:[#allocation8 + $0x10] sm:$0xff] %v1967_v56 }
 0x36b   :  { %2188 = vmatmul.mubr.msk.bf16.vlgmr.msra.gmra.mxu0 %vm195_vm4, %v320_v55 }
 0x36c   :  { %2199 = vmatprep.mubr.msk.bf16.mxu0 %vm2555_vm0, %v2554_v0  ;;  %2198 = vmatpush3.bf16.msra.mxu0 %v2697_v57 }
 0x36d   :  { %2209 = vmatprep.subr.bf16.mxu0 %v2554_v0 }
 0x423   :  { %v251_v59 = vpop.f32.mrf.mxu0 }
 0x424   :  { %v257_v60 = vpack.c.bf16 %v251_v59, %v251_v59 }
 0x425   :  { %v2177_v61 = vpop.f32.mrf.mxu0 }
 0x426   :  { %2200 = vmatmul.mubr.msk.bf16.vlgmr.msra.gmra.mxu0 %vm146_vm2, %v257_v60 }
 0x427   :  { %v254_v62 = vpop.f32.mrf.mxu0  ;;  %2211 = vmatprep.mubr.msk.bf16.mxu0 %vm2555_vm0, %v2554_v0 }
 0x429   :  { %v2178_v63 = vpop.f32.mrf.mxu0 }
 0x42b   :  { %v363_v2 = vpop.f32.mrf.mxu0 }
 0x42c   :  { %v369_v5 = vpack.c.bf16 %v363_v2, %v363_v2 }
 0x42d   :  { %v2189_v6 = vpop.f32.mrf.mxu0 }
 0x42e   :  { %2194 = vmatmul.mubr.msk.bf16.vlgmr.msra.gmra.mxu1 %vm146_vm2, %v369_v5 }
 0x42f   :  { %2204 = vmatpush3.bf16.xpose.msra.mxu1 %v476_v7  ;;  %v366_v8 = vpop.f32.mrf.mxu0  ;;  %2205 = vmatprep.mubr.msk.bf16.mxu1 %vm2555_vm0, %v2554_v0 }
 0x430   :  { %2215 = vmatprep.subr.bf16.mxu1 %v2554_v0 }
 0x431   :  { %v2190_v9 = vpop.f32.mrf.mxu0 }
 0x436   :  { %2206 = vmatmul.mubr.msk.bf16.vlgmr.msra.gmra.mxu1 %vm146_vm2, %v2676_v42 }
 0x437   :  { %2216 = vmatpush3.bf16.xpose.msra.mxu1 %v589_v11  ;;  %2217 = vmatprep.mubr.msk.bf16.mxu1 %vm2555_vm0, %v2554_v0 }
 0x438   :  { %2227 = vmatprep.subr.bf16.mxu1 %v2554_v0 }
 0x43e   :  { %2218 = vmatmul.mubr.msk.bf16.vlgmr.msra.gmra.mxu1 %vm146_vm2, %v582_v12 }
 0x43f   :  { %2228 = vmatpush3.bf16.msra.mxu1 %v2415_v58  ;;  %2229 = vmatprep.mubr.msk.bf16.mxu1 %vm2555_vm0, %v2554_v0 }
 0x440   :  { %2239 = vmatprep.subr.bf16.mxu1 %v2554_v0 }
 0x4e6   :  { %v462_v13 = vpop.f32.mrf.mxu0 }
 0x4e8   :  { %v2201_v14 = vpop.f32.mrf.mxu0 }
 0x4ea   :  { %v465_v15 = vpop.f32.mrf.mxu0 }
 0x4ec   :  { %v2202_v16 = vpop.f32.mrf.mxu0 }
 0x4ee   :  { %v413_v17 = vpop.f32.mrf.mxu1 }
 0x4ef   :  { %v463_v18 = vadd.f32 %v462_v13, %v413_v17 }
 0x4f0   :  { %v2195_v20 = vpop.f32.mrf.mxu1 }
 0x4f1   :  { %v783_v37 = vadd.f32 %v2733_v36, %v463_v18 }
 0x4f2   :  { %v416_v22 = vpop.f32.mrf.mxu1 }
 0x4f3   :  { %v785_v38 = vadd.f32 %v783_v37, %v2635_v3  ;;  %v2773_v37 = vld [vmem:[#allocation5 + $0x8] sm:$0xff]  }
 0x4f4   :  { %v2196_v23 = vpop.f32.mrf.mxu1 }
 0x4f5   :  { %v787_v39 = vsel %vm92_vm1, %v785_v38, 0.0 }
 0x4f6   :  { %v512_v24 = vpop.f32.mrf.mxu1 }
 0x4f7   :  { %v519_v25 = vsel %vm518_vm6, -1e+30, %v512_v24 }
 0x4f8   :  { %v2207_v26 = vpop.f32.mrf.mxu1  ;;  %v520_v27 = vsel %vm195_vm4, %v519_v25, -inf }
 0x4f9   :  { %521 = vmax.xlane.f32.xlu0 %v520_v27 }
 0x4fa   :  { %v515_v28 = vpop.f32.mrf.mxu1 }
 0x4fc   :  { %v2208_v29 = vpop.f32.mrf.mxu1 }
 0x4fe   :  { %v625_v30 = vpop.f32.mrf.mxu1 }
 0x4ff   :  { %v631_v31 = vsel %vm518_vm6, -1e+30, %v625_v30 }
 0x500   :  { %v2219_v32 = vpop.f32.mrf.mxu1  ;;  %v632_v33 = vsel %vm195_vm4, %v631_v31, -inf }
 0x501   :  { %633 = vmax.xlane.f32.xlu1 %v632_v33 }
 0x502   :  { %v628_v34 = vpop.f32.mrf.mxu1 }
 0x504   :  { %v2220_v35 = vpop.f32.mrf.mxu1 }
 0x512   :  { %532 = vrot.lane.b32.xlu1 %v2676_v42, %s2551_s30 }
 0x536   :  { %788 = vadd.xlane.f32.xlu1 %v787_v39 }
 0x582   :  { %v522_v41 = vpop.xlane.xlu0 %521 }
 0x583   :  { %v523_v43 = vsub.f32 %v519_v25, %v522_v41 }
 0x585   :  { %v524_v44 = vmul.f32 1.442695, %v523_v43 }
 0x587   :  { %2446 = vpow2.f32 %v524_v44 }
 0x58a   :  { %v634_v45 = vpop.xlane.xlu1 %633 }
 0x58b   :  { %v635_v46 = vsub.f32 %v631_v31, %v634_v45 }
 0x58d   :  { %v636_v47 = vmul.f32 1.442695, %v635_v46 }
 0x58e   :  { %v533_v48 = vpop.permute.xlu1 %532 }
 0x58f   :  { %2448 = vpow2.f32 %v636_v47  ;;  %v538_v49 = vsel %vm213_vm5, %v533_v48, 0  ;;  %v2026_v47 = vld [vmem:[%s3020_s6 + $0x2] ss:$0 sm:$0xff] }
 0x590   :  { %2210 = vmatpush3.bf16.msra.mxu0 %v538_v49 }
 0x591   :  { %2221 = vmatprep.subr.bf16.mxu0 %v2554_v0 }
 0x594   :  { %v2447_v3 = vpop.eup %2446 }
 0x595   :  { %v526_v50 = vsel %vm195_vm4, %v2447_v3, 0.0 }
 0x596   :  { %527 = vadd.xlane.f32.xlu0 %v526_v50 }
 0x59c   :  { %v2449_v51 = vpop.eup %2448 }
 0x59d   :  { %v638_v52 = vsel %vm195_vm4, %v2449_v51, 0.0 }
 0x59e   :  { %639 = vadd.xlane.f32.xlu0 %v638_v52 }
 0x5b4   :  { %644 = vrot.lane.b32.xlu0 %v2676_v42, %s2559_s28 }
 0x5bf   :  { %v789_v53 = vpop.xlane.xlu1 %788 }
 0x5c0   :  { %v794_v54 = vmul.f32 0.03125, %v789_v53 }
 0x5c2   :  { %v2744_v55 = vsub.f32 %v785_v38, %v794_v54  ;;  %v2785_v38 = vld [vmem:[#allocation5 + $0x10] sm:$0xff]  }
 0x5c4   :  { %v798_v56 = vmul.f32 %v2744_v55, %v2744_v55 }
 0x5c6   :  { %v800_v58 = vsel %vm92_vm1, %v798_v56, 0.0 }
 0x5c7   :  { %801 = vadd.xlane.f32.xlu1 %v800_v58 }
 0x5d8   :  { %828 = vperm.xlu1 %2410, %v2668_v19  }
 0x61f   :  { %v528_v59 = vpop.xlane.xlu0 %527 }
 0x620   :  { %2450 = vrcp.f32 %v528_v59 }
 0x627   :  { %v640_v60 = vpop.xlane.xlu0 %639 }
 0x628   :  { %2452 = vrcp.f32 %v640_v60 }
 0x62b   :  { %v645_v63 = vpop.permute.xlu0 %644 }
 0x62c   :  { %v650_v2 = vsel %vm213_vm5, %v645_v63, 0 }
 0x62d   :  { %v2451_v61 = vpop.eup %2450 }
 0x62e   :  { %v530_v62 = vmul.f32 %v2451_v61, %v2447_v3  ;;  %v2027_v3 = vld [vmem:[%s3020_s6 + $0x3] ss:$0 sm:$0xff]  ;;  %v2808_v61 = vld [vmem:[#allocation5 + $0x38] sm:$0xff]  }
 0x630   :  { %v531_v42 = vpack.c.bf16 %v530_v62, %v530_v62  ;;  %v1966_v1 = vsel %vm195_vm4, %v530_v62, 0.0 }
 0x631   :  { %1970 = vst [vmem:[#allocation8 + $0x8] sm:$0xff] %v1966_v1 }
 0x632   :  { %2212 = vmatmul.mubr.msk.bf16.vlgmr.msra.gmra.mxu0 %vm195_vm4, %v531_v42 }
 0x633   :  { %2222 = vmatpush3.bf16.msra.mxu0 %v650_v2  ;;  %2223 = vmatprep.mubr.msk.bf16.mxu0 %vm2555_vm0, %v2554_v0  ;;  %v2819_v2 = vld [vmem:[#allocation5 + $0x30] sm:$0xff]  }
 0x634   :  { %2233 = vmatprep.subr.bf16.mxu0 %v2554_v0 }
 0x635   :  { %v2453_v19 = vpop.eup %2452 }
 0x636   :  { %v642_v5 = vmul.f32 %v2453_v19, %v2449_v51 }
 0x638   :  { %v643_v6 = vpack.c.bf16 %v642_v5, %v642_v5  ;;  %v1968_v7 = vsel %vm195_vm4, %v642_v5, 0.0 }
 0x639   :  { %1972 = vst [vmem:[#allocation8 + $0x18] sm:$0xff] %v1968_v7  ;;  %v2824_v7 = vld [vmem:[#allocation5 + $0x28] sm:$0xff]  }
 0x63a   :  { %2224 = vmatmul.mubr.msk.bf16.vlgmr.msra.gmra.mxu0 %vm195_vm4, %v643_v6 }
 0x63b   :  { %2234 = vmatpush3.bf16.msra.mxu0 %v2697_v57  ;;  %2235 = vmatprep.mubr.msk.bf16.mxu0 %vm2555_vm0, %v2554_v0 }
 0x63c   :  { %2247 = vmatprep.subr.bf16.mxu0 %v2554_v0 }
 0x6f2   :  { %v574_v8 = vpop.f32.mrf.mxu0 }
 0x6f3   :  { %v580_v9 = vpack.c.bf16 %v574_v8, %v574_v8 }
 0x6f4   :  { %v2213_v10 = vpop.f32.mrf.mxu0 }
 0x6f5   :  { %2236 = vmatmul.mubr.msk.bf16.vlgmr.msra.gmra.mxu0 %vm146_vm2, %v580_v9  ;;  %v2827_v9 = vld [vmem:[#allocation5 + $0x58] sm:$0xff]  }
 0x6f6   :  { %v577_v11 = vpop.f32.mrf.mxu0  ;;  %2251 = vmatprep.mubr.msk.bf16.mxu0 %vm2555_vm0, %v2554_v0  ;;  %2248 = vmatpush3.bf16.msra.mxu0 %v2773_v37 }
 0x6f7   :  { %2249 = vmatprep.subr.bf16.mxu0 %v2554_v0  ;;  %v2832_v11 = vld [vmem:[#allocation5 + $0x20] sm:$0xff]  }
 0x6f8   :  { %v2214_v12 = vpop.f32.mrf.mxu0 }
 0x6f9   :  { %v2839_v12 = vld [vmem:[#allocation5 + $0x50] sm:$0xff]  }
 0x6fa   :  { %v686_v13 = vpop.f32.mrf.mxu0 }
 0x6fb   :  { %v692_v14 = vpack.c.bf16 %v686_v13, %v686_v13 }
 0x6fc   :  { %v2225_v15 = vpop.f32.mrf.mxu0 }
 0x6fd   :  { %2230 = vmatmul.mubr.msk.bf16.vlgmr.msra.gmra.mxu1 %vm146_vm2, %v692_v14  ;;  %v2845_v15 = vld [vmem:[#allocation5 + $0x48] sm:$0xff]  }
 0x6fe   :  { %v689_v57 = vpop.f32.mrf.mxu0  ;;  %2243 = vmatprep.mubr.msk.bf16.mxu1 %vm2555_vm0, %v2554_v0 }
 0x700   :  { %v2226_v16 = vpop.f32.mrf.mxu0 }
 0x7b5   :  { %v773_v17 = vpop.f32.mrf.mxu0 }
 0x7b7   :  { %v2237_v18 = vpop.f32.mrf.mxu0 }
 0x7b9   :  { %v776_v20 = vpop.f32.mrf.mxu0 }
 0x7ba   :  { %v2428_v20 = vld [vmem:[#allocation5 + $0x40] sm:$0xff]  }
 0x7bb   :  { %v2238_v22 = vpop.f32.mrf.mxu0 }
 0x7bd   :  { %v730_v23 = vpop.f32.mrf.mxu1 }
 0x7be   :  { %v774_v24 = vadd.f32 %v773_v17, %v730_v23  ;;  %v2850_v17 = vld [vmem:[#allocation5 + $0x78] sm:$0xff]   ;;  %v2861_v23 = vld [vmem:[#allocation5 + $0x70] sm:$0xff]  }
 0x7bf   :  { %v2231_v25 = vpop.f32.mrf.mxu1 }
 0x7c0   :  { %v784_v26 = vadd.f32 %v2733_v36, %v774_v24  ;;  %v2780_v36 = vld [vmem:[#allocation5 + $0x18] sm:$0xff]  }
 0x7c1   :  { %v733_v27 = vpop.f32.mrf.mxu1  ;;  %2240 = vmatpush3.bf16.msra.mxu1 %v2780_v36 }
 0x7c2   :  { %v786_v28 = vadd.f32 %v784_v26, %v2640_v4  ;;  %v2777_v4 = vld [vmem:[#allocation5] sm:$0xff]   ;;  %2241 = vmatprep.subr.bf16.mxu1 %v2554_v0  ;;  %v2430_v27 = vld [vmem:[#allocation5 + $0x68] sm:$0xff]  }
 0x7c3   :  { %v2232_v29 = vpop.f32.mrf.mxu1  ;;  %2250 = vmatpush3.bf16.msra.mxu0 %v2777_v4 }
 0x7c4   :  { %v790_v30 = vsel %vm92_vm1, %v786_v28, 0.0  ;;  %2263 = vmatprep.subr.bf16.mxu0 %v2554_v0 }
 0x7c5   :  { %791 = vadd.xlane.f32.xlu0 %v790_v30  ;;  %2242 = vmatpush3.bf16.msra.mxu1 %v2785_v38 }
 0x7c6   :  { %2255 = vmatprep.subr.bf16.mxu1 %v2554_v0 }
 0x84e   :  { %v792_v31 = vpop.xlane.xlu0 %791 }
 0x84f   :  { %v795_v32 = vmul.f32 0.03125, %v792_v31  ;;  %v2431_v31 = vld [vmem:[#allocation5 + $0x60] sm:$0xff]  }
 0x851   :  { %v797_v33 = vsub.f32 %v786_v28, %v795_v32 }
 0x853   :  { %v799_v34 = vmul.f32 %v797_v33, %v797_v33 }
 0x855   :  { %v803_v35 = vsel %vm92_vm1, %v799_v34, 0.0 }
 0x856   :  { %804 = vadd.xlane.f32.xlu0 %v803_v35 }
 0x86c   :  { %833 = vperm.xlu0 %2411, %v2723_v21   ;;  %v802_v21 = vpop.xlane.xlu1 %801 }
 0x86d   :  { %v806_v39 = vmul.f32 0.03125, %v802_v21  ;;  %v2433_v21 = vld [vmem:[#allocation5 + $0x80] sm:$0xff]  }
 0x86f   :  { %v808_v40 = vadd.f32 1e-05, %v806_v39 }
 0x870   :  { %v2796_v53 = vpop.permute.xlu1 %828 }
 0x871   :  { %2454 = vrsqrt.f32 %v808_v40 }
 0x87e   :  { %v2455_v45 = vpop.eup %2454 }
 0x87f   :  { %v812_v46 = vmul.f32 %v2455_v45, %v2744_v55 }
 0x881   :  { %v818_v48 = vmul.f32 %v2026_v47, %v812_v46 }
 0x883   :  { %v824_v51 = vadd.f32 %v2027_v3, %v818_v48 }
 0x885   :  { %v2801_v55 = vmul.f32 %v2796_v53, %v824_v51  ;;  %v2435_v51 = vld [vmem:[%s3019_s5 + $0x10] sm:$0xff]  }
 0x8df   :  { %v805_v41 = vpop.xlane.xlu0 %804 }
 0x8e0   :  { %v807_v43 = vmul.f32 0.03125, %v805_v41 }
 0x8e2   :  { %v809_v44 = vadd.f32 1e-05, %v807_v43 }
 0x8e4   :  { %2456 = vrsqrt.f32 %v809_v44 }
 0x8e7   :  { %v2798_v54 = vpop.permute.xlu0 %833 }
 0x8f1   :  { %v2457_v49 = vpop.eup %2456 }
 0x8f2   :  { %v813_v50 = vmul.f32 %v2457_v49, %v797_v33  ;;  %v2432_v33 = vld [vmem:[#allocation5 + $0x88] sm:$0xff]  }
 0x8f4   :  { %v819_v52 = vmul.f32 %v2026_v47, %v813_v50  ;;  %v2434_v50 = vld [vmem:[%s3019_s5 + $0x18] sm:$0xff]  }
 0x8f6   :  { %v825_v56 = vadd.f32 %v2027_v3, %v819_v52  ;;  %v2436_v52 = vld [vmem:[%s3019_s5 + $0x8] sm:$0xff]  }
 0x8f8   :  { %v2804_v58 = vmul.f32 %v2798_v54, %v825_v56  ;;  %v2437_v56 = vld [vmem:[%s3019_s5] sm:$0xff]  }
 0x8fa   :  { %v838_v59 = vpack.c.bf16 %v2804_v58, %v2801_v55 }
 0x8fc   :  { %v840_v60 = vrot.slane %v838_v59, 6  ;;  %v1412_v57 = vrot.slane %v838_v59, 2 }
 0x8fe   :  { %v844_v62 = vsel %vm841_vm7, 0, %v840_v60  ;;  %v1414_v22 = vsel %vm841_vm7, 0, %v1412_v57 }
 0x8ff   :  { %v2812_v63 = vsel %vm845_vm8, %v844_v62, 0  ;;  %v2867_v26 = vsel %vm845_vm8, %v1414_v22, 0 }
 0x900   :  { %v858_v42 = vshll.u32 %v2812_v63, 16  ;;  %2252 = vmatmul.mubr.msk.bf16.vlgmr.msra.gmra.mxu0 %vm92_vm1, %v2812_v63  ;;  %v856_v1 = vshrl.u32 %v2812_v63, 16  ;;  %v977_v16 = vrot.slane %v2812_v63, 1  ;;  %v1103_v28 = vrot.slane %v2812_v63, 2 }
 0x901   :  { %2264 = vmatpush3.bf16.msra.mxu0 %v2808_v61  ;;  %2267 = vmatprep.mubr.msk.bf16.mxu0 %vm2555_vm0, %v2554_v0  ;;  %v2873_v29 = vshll.u32 %v2867_v26, 16  ;;  %v1229_v34 = vrot.slane %v2812_v63, 3  ;;  %v2889_v35 = vshrl.u32 %v2867_v26, 16  ;;  %v1508_v39 = vrot.slane %v2867_v26, 1 }
 0x902   :  { %2265 = vmatprep.subr.bf16.mxu0 %v2554_v0  ;;  %v860_v19 = vrot.slane %v858_v42, 1  ;;  %v1039_v5 = vrot.slane %v856_v1, 1  ;;  %v1040_v6 = vrot.slane %v858_v42, 2  ;;  %v1165_v13 = vrot.slane %v856_v1, 2 }
 0x903   :  { %v1166_v14 = vrot.slane %v858_v42, 3  ;;  %v1291_v24 = vrot.slane %v856_v1, 3  ;;  %v1292_v25 = vrot.slane %v858_v42, 4  ;;  %v1420_v32 = vrot.slane %v2873_v29, 1 }
 0x904   :  { %v861_v8 = vor.u32 %v860_v19, %v856_v1  ;;  %v1041_v10 = vor.u32 %v1040_v6, %v1039_v5  ;;  %v1554_v40 = vrot.slane %v2873_v29, 2  ;;  %v1692_v43 = vrot.slane %v2867_v26, 3 }
 0x905   :  { %2266 = vmatpush3.bf16.msra.mxu0 %v2819_v2  ;;  %v1167_v18 = vor.u32 %v1166_v14, %v1165_v13  ;;  %v1293_v30 = vor.u32 %v1292_v25, %v1291_v24  ;;  %v1645_v44 = vrot.slane %v2889_v35, 2  ;;  %v1646_v45 = vrot.slane %v2873_v29, 3 }
 0x906   :  { %2244 = vmatmul.mubr.msk.bf16.vlgmr.msra.gmra.mxu1 %vm92_vm1, %v861_v8  ;;  %2279 = vmatprep.subr.bf16.mxu0 %v2554_v0  ;;  %v1784_v47 = vrot.slane %v2867_v26, 4  ;;  %v1737_v48 = vrot.slane %v2889_v35, 3  ;;  %v1738_v49 = vrot.slane %v2873_v29, 4 }
 0x907   :  { %2256 = vmatpush3.bf16.msra.mxu1 %v2824_v7  ;;  %2259 = vmatprep.mubr.msk.bf16.mxu1 %vm2555_vm0, %v2554_v0  ;;  %v1647_v46 = vor.u32 %v1646_v45, %v1645_v44 }
 0x908   :  { %2268 = vmatmul.mubr.msk.bf16.vlgmr.msra.gmra.mxu0 %vm92_vm1, %v1041_v10  ;;  %2257 = vmatprep.subr.bf16.mxu1 %v2554_v0  ;;  %v1739_v3 = vor.u32 %v1738_v49, %v1737_v48 }
 0x909   :  { %2280 = vmatpush3.bf16.msra.mxu0 %v2827_v9  ;;  %2283 = vmatprep.mubr.msk.bf16.mxu0 %vm2555_vm0, %v2554_v0 }
 0x90a   :  { %2281 = vmatprep.subr.bf16.mxu0 %v2554_v0 }
 0x90b   :  { %2258 = vmatpush3.bf16.msra.mxu1 %v2832_v11 }
 0x90c   :  { %2271 = vmatprep.subr.bf16.mxu1 %v2554_v0 }
 0x90d   :  { %2282 = vmatpush3.bf16.msra.mxu0 %v2839_v12 }
 0x90e   :  { %2260 = vmatmul.mubr.msk.bf16.vlgmr.msra.gmra.mxu1 %vm92_vm1, %v977_v16  ;;  %2295 = vmatprep.subr.bf16.mxu0 %v2554_v0 }
 0x90f   :  { %2272 = vmatpush3.bf16.msra.mxu1 %v2845_v15  ;;  %2275 = vmatprep.mubr.msk.bf16.mxu1 %vm2555_vm0, %v2554_v0 }
 0x910   :  { %2284 = vmatmul.mubr.msk.bf16.vlgmr.msra.gmra.mxu0 %vm92_vm1, %v1167_v18  ;;  %2273 = vmatprep.subr.bf16.mxu1 %v2554_v0 }
 0x911   :  { %2296 = vmatpush3.bf16.msra.mxu0 %v2850_v17  ;;  %2299 = vmatprep.mubr.msk.bf16.mxu0 %vm2555_vm0, %v2554_v0 }
 0x912   :  { %2297 = vmatprep.subr.bf16.mxu0 %v2554_v0 }
 0x913   :  { %2274 = vmatpush3.bf16.msra.mxu1 %v2428_v20 }
 0x914   :  { %2287 = vmatprep.subr.bf16.mxu1 %v2554_v0 }
 0x915   :  { %2298 = vmatpush3.bf16.msra.mxu0 %v2861_v23 }
 0x916   :  { %2276 = vmatmul.mubr.msk.bf16.vlgmr.msra.gmra.mxu1 %vm92_vm1, %v1103_v28  ;;  %2311 = vmatprep.subr.bf16.mxu0 %v2554_v0 }
 0x917   :  { %2288 = vmatpush3.bf16.msra.mxu1 %v2430_v27  ;;  %2291 = vmatprep.mubr.msk.bf16.mxu1 %vm2555_vm0, %v2554_v0 }
 0x918   :  { %2300 = vmatmul.mubr.msk.bf16.vlgmr.msra.gmra.mxu0 %vm92_vm1, %v1293_v30  ;;  %2289 = vmatprep.subr.bf16.mxu1 %v2554_v0 }
 0x919   :  { %2312 = vmatpush3.bf16.msra.mxu0 %v2780_v36  ;;  %2315 = vmatprep.mubr.msk.bf16.mxu0 %vm2555_vm0, %v2554_v0  ;;  %v1421_v36 = vor.u32 %v1420_v32, %v2889_v35 }
 0x91a   :  { %2313 = vmatprep.subr.bf16.mxu0 %v2554_v0 }
 0x91b   :  { %2290 = vmatpush3.bf16.msra.mxu1 %v2431_v31 }
 0x91c   :  { %2303 = vmatprep.subr.bf16.mxu1 %v2554_v0 }
 0x91d   :  { %2314 = vmatpush3.bf16.msra.mxu0 %v2785_v38  ;;  %v1355_v38 = vrot.slane %v2812_v63, 4 }
 0x91e   :  { %2292 = vmatmul.mubr.msk.bf16.vlgmr.msra.gmra.mxu1 %vm92_vm1, %v1229_v34  ;;  %2327 = vmatprep.subr.bf16.mxu0 %v2554_v0 }
 0x91f   :  { %2304 = vmatpush3.bf16.msra.mxu1 %v2432_v33  ;;  %2307 = vmatprep.mubr.msk.bf16.mxu1 %vm2555_vm0, %v2554_v0 }
 0x920   :  { %2316 = vmatmul.mubr.msk.bf16.vlgmr.msra.gmra.mxu0 %vm92_vm1, %v1421_v36  ;;  %2305 = vmatprep.subr.bf16.mxu1 %v2554_v0 }
 0x921   :  { %2328 = vmatpush3.bf16.msra.mxu0 %v2824_v7  ;;  %2331 = vmatprep.mubr.msk.bf16.mxu0 %vm2555_vm0, %v2554_v0 }
 0x922   :  { %2329 = vmatprep.subr.bf16.mxu0 %v2554_v0 }
 0x923   :  { %2306 = vmatpush3.bf16.msra.mxu1 %v2433_v21 }
 0x924   :  { %2319 = vmatprep.subr.bf16.mxu1 %v2554_v0 }
 0x925   :  { %2330 = vmatpush3.bf16.msra.mxu0 %v2832_v11 }
 0x926   :  { %2308 = vmatmul.mubr.msk.bf16.vlgmr.msra.gmra.mxu1 %vm92_vm1, %v1355_v38  ;;  %2343 = vmatprep.subr.bf16.mxu0 %v2554_v0 }
 0x927   :  { %2320 = vmatpush3.bf16.msra.mxu1 %v2773_v37  ;;  %2323 = vmatprep.mubr.msk.bf16.mxu1 %vm2555_vm0, %v2554_v0  ;;  %v1600_v37 = vrot.slane %v2867_v26, 2 }
 0x928   :  { %2332 = vmatmul.mubr.msk.bf16.vlgmr.msra.gmra.mxu0 %vm92_vm1, %v1508_v39  ;;  %2321 = vmatprep.subr.bf16.mxu1 %v2554_v0 }
 0x929   :  { %2344 = vmatpush3.bf16.msra.mxu0 %v2845_v15  ;;  %2347 = vmatprep.mubr.msk.bf16.mxu0 %vm2555_vm0, %v2554_v0 }
 0x92a   :  { %2345 = vmatprep.subr.bf16.mxu0 %v2554_v0 }
 0x92b   :  { %2322 = vmatpush3.bf16.msra.mxu1 %v2777_v4  ;;  %v1553_v4 = vrot.slane %v2889_v35, 1 }
 0x92c   :  { %2335 = vmatprep.subr.bf16.mxu1 %v2554_v0 }
 0x92d   :  { %2346 = vmatpush3.bf16.msra.mxu0 %v2428_v20  ;;  %v1555_v41 = vor.u32 %v1554_v40, %v1553_v4 }
 0x92e   :  { %2324 = vmatmul.mubr.msk.bf16.vlgmr.msra.gmra.mxu1 %vm92_vm1, %v2867_v26  ;;  %2359 = vmatprep.subr.bf16.mxu0 %v2554_v0 }
 0x92f   :  { %2336 = vmatpush3.bf16.msra.mxu1 %v2808_v61  ;;  %2339 = vmatprep.mubr.msk.bf16.mxu1 %vm2555_vm0, %v2554_v0 }
 0x930   :  { %2348 = vmatmul.mubr.msk.bf16.vlgmr.msra.gmra.mxu0 %vm92_vm1, %v1600_v37  ;;  %2337 = vmatprep.subr.bf16.mxu1 %v2554_v0 }
 0x931   :  { %2360 = vmatpush3.bf16.msra.mxu0 %v2430_v27  ;;  %2363 = vmatprep.mubr.msk.bf16.mxu0 %vm2555_vm0, %v2554_v0 }
 0x932   :  { %2361 = vmatprep.subr.bf16.mxu0 %v2554_v0 }
 0x933   :  { %2338 = vmatpush3.bf16.msra.mxu1 %v2819_v2 }
 0x934   :  { %2351 = vmatprep.subr.bf16.mxu1 %v2554_v0 }
 0x935   :  { %2362 = vmatpush3.bf16.msra.mxu0 %v2431_v31 }
 0x936   :  { %2340 = vmatmul.mubr.msk.bf16.vlgmr.msra.gmra.mxu1 %vm92_vm1, %v1555_v41  ;;  %2375 = vmatprep.subr.bf16.mxu0 %v2554_v0 }
 0x937   :  { %2352 = vmatpush3.bf16.msra.mxu1 %v2827_v9  ;;  %2355 = vmatprep.mubr.msk.bf16.mxu1 %vm2555_vm0, %v2554_v0 }
 0x938   :  { %2364 = vmatmul.mubr.msk.bf16.vlgmr.msra.gmra.mxu0 %vm92_vm1, %v1692_v43  ;;  %2353 = vmatprep.subr.bf16.mxu1 %v2554_v0 }
 0x939   :  { %2376 = vmatpush3.bf16.msra.mxu0 %v2432_v33  ;;  %2379 = vmatprep.mubr.msk.bf16.mxu0 %vm2555_vm0, %v2554_v0 }
 0x93a   :  { %2377 = vmatprep.subr.bf16.mxu0 %v2554_v0 }
 0x93b   :  { %2354 = vmatpush3.bf16.msra.mxu1 %v2839_v12 }
 0x93c   :  { %2367 = vmatprep.subr.bf16.mxu1 %v2554_v0 }
 0x93d   :  { %2378 = vmatpush3.bf16.msra.mxu0 %v2433_v21 }
 0x93e   :  { %2356 = vmatmul.mubr.msk.bf16.vlgmr.msra.gmra.mxu1 %vm92_vm1, %v1647_v46 }
 0x93f   :  { %2368 = vmatpush3.bf16.msra.mxu1 %v2850_v17  ;;  %2371 = vmatprep.mubr.msk.bf16.mxu1 %vm2555_vm0, %v2554_v0 }
 0x940   :  { %2380 = vmatmul.mubr.msk.bf16.vlgmr.msra.gmra.mxu0 %vm92_vm1, %v1784_v47  ;;  %2369 = vmatprep.subr.bf16.mxu1 %v2554_v0 }
 0x943   :  { %2370 = vmatpush3.bf16.msra.mxu1 %v2861_v23 }
 0x944   :  { %2383 = vmatprep.subr.bf16.mxu1 %v2554_v0 }
 0x946   :  { %2372 = vmatmul.mubr.msk.bf16.vlgmr.msra.gmra.mxu1 %vm92_vm1, %v1739_v3 }
 0x947   :  { %2391 = vmatprep.mubr.msk.bf16.mxu1 %vm2555_vm0, %v2554_v0  ;;  %2384 = vmatpush3.bf16.msra.mxu1 %v2434_v50 }
 0x948   :  { %2385 = vmatprep.subr.bf16.mxu1 %v2554_v0 }
 0x94b   :  { %2386 = vmatpush3.bf16.msra.mxu1 %v2435_v51 }
 0x94c   :  { %2387 = vmatprep.subr.bf16.mxu1 %v2554_v0 }
 0x94f   :  { %2388 = vmatpush3.bf16.msra.mxu1 %v2436_v52 }
 0x950   :  { %2389 = vmatprep.subr.bf16.mxu1 %v2554_v0 }
 0x953   :  { %2390 = vmatpush3.bf16.msra.mxu1 %v2437_v56 }
 0x9c0   :  { %v965_v59 = vpop.f32.mrf.mxu0 }
 0x9c2   :  { %v2253_v60 = vpop.f32.mrf.mxu0 }
 0x9c4   :  { %v968_v61 = vpop.f32.mrf.mxu0 }
 0x9c6   :  { %v911_v62 = vpop.f32.mrf.mxu1  ;;  %v2254_v63 = vpop.f32.mrf.mxu0 }
 0x9c7   :  { %v966_v41 = vadd.f32 %v965_v59, %v911_v62 }
 0x9c8   :  { %v2245_v42 = vpop.f32.mrf.mxu1  ;;  %v1091_v1 = vpop.f32.mrf.mxu0 }
 0x9ca   :  { %v914_v2 = vpop.f32.mrf.mxu1  ;;  %v2269_v19 = vpop.f32.mrf.mxu0 }
 0x9cc   :  { %v2246_v5 = vpop.f32.mrf.mxu1  ;;  %v1094_v6 = vpop.f32.mrf.mxu0 }
 0x9ce   :  { %v1027_v7 = vpop.f32.mrf.mxu1  ;;  %v2270_v8 = vpop.f32.mrf.mxu0 }
 0x9cf   :  { %v1033_v45 = vadd.f32 %v1027_v7, %v966_v41 }
 0x9d0   :  { %v2261_v9 = vpop.f32.mrf.mxu1  ;;  %v1217_v10 = vpop.f32.mrf.mxu0 }
 0x9d1   :  { %v1097_v50 = vadd.f32 %v1091_v1, %v1033_v45 }
 0x9d2   :  { %v1030_v11 = vpop.f32.mrf.mxu1  ;;  %v2285_v12 = vpop.f32.mrf.mxu0 }
 0x9d4   :  { %v2262_v13 = vpop.f32.mrf.mxu1  ;;  %v1220_v0 = vpop.f32.mrf.mxu0 }
 0x9d6   :  { %v1153_v14 = vpop.f32.mrf.mxu1  ;;  %v2286_v15 = vpop.f32.mrf.mxu0 }
 0x9d7   :  { %v1159_v56 = vadd.f32 %v1153_v14, %v1097_v50 }
 0x9d8   :  { %v2277_v57 = vpop.f32.mrf.mxu1  ;;  %v1343_v16 = vpop.f32.mrf.mxu0 }
 0x9d9   :  { %v1223_v5 = vadd.f32 %v1217_v10, %v1159_v56 }
 0x9da   :  { %v1156_v17 = vpop.f32.mrf.mxu1  ;;  %v2301_v18 = vpop.f32.mrf.mxu0 }
 0x9db   :  { %v2064_v17 = vld [vmem:[%s3020_s6 + $0x4] ss:$0 sm:$0xff] }
 0x9dc   :  { %v2278_v20 = vpop.f32.mrf.mxu1  ;;  %v1346_v22 = vpop.f32.mrf.mxu0 }
 0x9de   :  { %v1279_v23 = vpop.f32.mrf.mxu1  ;;  %v2302_v24 = vpop.f32.mrf.mxu0 }
 0x9df   :  { %v1285_v6 = vadd.f32 %v1279_v23, %v1223_v5 }
 0x9e0   :  { %v2293_v25 = vpop.f32.mrf.mxu1  ;;  %v1459_v26 = vpop.f32.mrf.mxu0 }
 0x9e1   :  { %v1349_v1 = vadd.f32 %v1343_v16, %v1285_v6 }
 0x9e2   :  { %v1282_v27 = vpop.f32.mrf.mxu1  ;;  %v2317_v28 = vpop.f32.mrf.mxu0 }
 0x9e4   :  { %v2294_v29 = vpop.f32.mrf.mxu1  ;;  %v1462_v30 = vpop.f32.mrf.mxu0 }
 0x9e5   :  { %v2065_v30 = vld [vmem:[%s3020_s6 + $0x5] ss:$0 sm:$0xff] }
 0x9e6   :  { %v1405_v31 = vpop.f32.mrf.mxu1  ;;  %v2318_v32 = vpop.f32.mrf.mxu0 }
 0x9e7   :  { %v1411_v14 = vadd.f32 %v1405_v31, %v1349_v1 }
 0x9e8   :  { %v2309_v33 = vpop.f32.mrf.mxu1  ;;  %v1546_v34 = vpop.f32.mrf.mxu0 }
 0x9e9   :  { %v1833_v23 = vadd.f32 %v2064_v17, %v1411_v14 }
 0x9ea   :  { %v1408_v35 = vpop.f32.mrf.mxu1  ;;  %v2333_v36 = vpop.f32.mrf.mxu0 }
 0x9eb   :  { %v1835_v28 = vmax.f32 %v1833_v23, 0.0 }
 0x9ec   :  { %v2310_v21 = vpop.f32.mrf.mxu1  ;;  %v1549_v38 = vpop.f32.mrf.mxu0 }
 0x9ee   :  { %v1501_v39 = vpop.f32.mrf.mxu1  ;;  %v2334_v37 = vpop.f32.mrf.mxu0 }
 0x9ef   :  { %v1502_v48 = vadd.f32 %v1501_v39, %v1459_v26 }
 0x9f0   :  { %v2325_v4 = vpop.f32.mrf.mxu1  ;;  %v1638_v40 = vpop.f32.mrf.mxu0 }
 0x9f1   :  { %v1552_v60 = vadd.f32 %v1546_v34, %v1502_v48 }
 0x9f2   :  { %v1504_v43 = vpop.f32.mrf.mxu1  ;;  %v2349_v44 = vpop.f32.mrf.mxu0 }
 0x9f4   :  { %v2326_v46 = vpop.f32.mrf.mxu1  ;;  %v1641_v47 = vpop.f32.mrf.mxu0 }
 0x9f6   :  { %v1593_v49 = vpop.f32.mrf.mxu1  ;;  %v2350_v3 = vpop.f32.mrf.mxu0 }
 0x9f7   :  { %v1599_v42 = vadd.f32 %v1593_v49, %v1552_v60 }
 0x9f8   :  { %v2341_v51 = vpop.f32.mrf.mxu1  ;;  %v1730_v52 = vpop.f32.mrf.mxu0 }
 0x9f9   :  { %v1644_v7 = vadd.f32 %v1638_v40, %v1599_v42 }
 0x9fa   :  { %v1596_v61 = vpop.f32.mrf.mxu1  ;;  %v2365_v63 = vpop.f32.mrf.mxu0 }
 0x9fc   :  { %v2342_v2 = vpop.f32.mrf.mxu1  ;;  %v1733_v19 = vpop.f32.mrf.mxu0 }
 0x9fe   :  { %v1685_v59 = vpop.f32.mrf.mxu1  ;;  %v2366_v62 = vpop.f32.mrf.mxu0 }
 0x9ff   :  { %v1691_v11 = vadd.f32 %v1685_v59, %v1644_v7 }
 0xa00   :  { %v2357_v8 = vpop.f32.mrf.mxu1  ;;  %v1822_v9 = vpop.f32.mrf.mxu0 }
 0xa01   :  { %v1736_v57 = vadd.f32 %v1730_v52, %v1691_v11 }
 0xa02   :  { %v1688_v12 = vpop.f32.mrf.mxu1  ;;  %v2381_v13 = vpop.f32.mrf.mxu0 }
 0xa04   :  { %v2358_v0 = vpop.f32.mrf.mxu1  ;;  %v1825_v15 = vpop.f32.mrf.mxu0 }
 0xa06   :  { %v1777_v18 = vpop.f32.mrf.mxu1  ;;  %v2382_v10 = vpop.f32.mrf.mxu0 }
 0xa07   :  { %v1783_v20 = vadd.f32 %v1777_v18, %v1736_v57 }
 0xa08   :  { %v2373_v22 = vpop.f32.mrf.mxu1 }
 0xa09   :  { %v1828_v24 = vadd.f32 %v1822_v9, %v1783_v20 }
 0xa0a   :  { %v1780_v25 = vpop.f32.mrf.mxu1 }
 0xa0b   :  { %v1834_v26 = vadd.f32 %v2064_v17, %v1828_v24 }
 0xa0c   :  { %v2374_v27 = vpop.f32.mrf.mxu1 }
 0xa0d   :  { %v1836_v29 = vmax.f32 %v1834_v26, 0.0 }
 0xa0f   :  { %v1837_v16 = vpack.c.bf16 %v1836_v29, %v1835_v28 }
 0xa11   :  { %2392 = vmatmul.mubr.msk.bf16.vlgmr.msra.gmra.mxu1 %vm1874_vm9, %v1837_v16 }
 0xad1   :  { %v1912_v31 = vpop.f32.mrf.mxu1 }
 0xad2   :  { %v1913_v32 = vadd.f32 %v2065_v30, %v1912_v31 }
 0xad3   :  { %v2393_v33 = vpop.f32.mrf.mxu1 }
 0xad4   :  { %v1919_v34 = vadd.f32 %v1913_v32, %v2801_v55 }
 0xad5   :  { %v1915_v35 = vpop.f32.mrf.mxu1 }
 0xad6   :  { %v1916_v36 = vadd.f32 %v2065_v30, %v1915_v35  ;;  %v1921_v21 = vsel %vm92_vm1, %v1919_v34, 0.0 }
 0xad7   :  { %1922 = vadd.xlane.f32.xlu1 %v1921_v21  ;;  %v2394_v38 = vpop.f32.mrf.mxu1 }
 0xad8   :  { %v1920_v39 = vadd.f32 %v1916_v36, %v2804_v58 }
 0xada   :  { %v1924_v37 = vsel %vm92_vm1, %v1920_v39, 0.0 }
 0xadb   :  { %1925 = vadd.xlane.f32.xlu0 %v1924_v37 }
 0xb60   :  { %v1923_v4 = vpop.xlane.xlu1 %1922 }
 0xb61   :  { %v1927_v40 = vmul.f32 0.03125, %v1923_v4 }
 0xb63   :  { %v1929_v41 = vsub.f32 %v1919_v34, %v1927_v40 }
 0xb64   :  { %v1926_v43 = vpop.xlane.xlu0 %1925 }
 0xb65   :  { %v1928_v44 = vmul.f32 0.03125, %v1926_v43  ;;  %v1931_v45 = vmul.f32 %v1929_v41, %v1929_v41 }
 0xb67   :  { %v1930_v46 = vsub.f32 %v1920_v39, %v1928_v44  ;;  %v1933_v55 = vsel %vm92_vm1, %v1931_v45, 0.0 }
 0xb68   :  { %1934 = vadd.xlane.f32.xlu1 %v1933_v55 }
 0xb69   :  { %v1932_v47 = vmul.f32 %v1930_v46, %v1930_v46 }
 0xb6b   :  { %v1936_v48 = vsel %vm92_vm1, %v1932_v47, 0.0 }
 0xb6c   :  { %1937 = vadd.xlane.f32.xlu1 %v1936_v48 }
 0xb6d   :  { %2513 = shalt.err (!%p2510_p0)
}
 0xb6e   :  { %s2562_s24 = smov 128   ;;  %s2563_s25 = smov 8   ;;  %v2071_v60 = vld [vmem:[%s3020_s6 + $0x6] ss:$0 sm:$0xff]  ;;  %v2072_v63 = vld [vmem:[%s3020_s6 + $0x7] ss:$0 sm:$0xff] }
 0xb6f   :  { %1996 = dma.vmem_to_hbm [thread:$0]  %s1991_s23, 512, %s3022_s8, [#allocation9], %s2562_s24, %s2562_s24, %s2563_s25  }
 0xb70   :  { %s2564_s8 = smov [#allocation7]  }
 0xb71   :  { %s1978_s10 = sshll.u32 %s2564_s8, 4  ;;  %s1979_s10 = int_to_ptr.vmem [resolvable:$true] %s1978_s10 }
 0xb72   :  { %s2522_s6 = scalar_lea.vmem %s1979_s10, 256  ;;  %p2527_p2 = scmp.lt.s32.totalorder %s1979_s10, %s1979_s10 }
 0xb73   :  { %p2523_p1 = scmp.ne.s32.totalorder %s1979_s10, %s2522_s6  ;;  %p2528_p3 = scmp.lt.s32.totalorder %s2522_s6, %s2522_s6 }
 0xb75   :  { %p2529_p4 = por %p2528_p3, %p2527_p2 }
 0xb77   :  { %p2530_p5 = pnand %p2529_p4, %p2523_p1 }
 0xbf1   :  { %v1935_v58 = vpop.xlane.xlu1 %1934 }
 0xbf2   :  { %v1939_v49 = vmul.f32 0.03125, %v1935_v58 }
 0xbf4   :  { %v1941_v3 = vadd.f32 1e-05, %v1939_v49 }
 0xbf5   :  { %v1938_v50 = vpop.xlane.xlu1 %1937 }
 0xbf6   :  { %2458 = vrsqrt.f32 %v1941_v3  ;;  %v1940_v51 = vmul.f32 0.03125, %v1938_v50 }
 0xbf8   :  { %v1942_v52 = vadd.f32 1e-05, %v1940_v51 }
 0xbfa   :  { %2460 = vrsqrt.f32 %v1942_v52 }
 0xc03   :  { %v2459_v56 = vpop.eup %2458 }
 0xc04   :  { %v1945_v61 = vmul.f32 %v2459_v56, %v1929_v41 }
 0xc06   :  { %v1951_v42 = vmul.f32 %v2071_v60, %v1945_v61 }
 0xc07   :  { %v2461_v2 = vpop.eup %2460 }
 0xc08   :  { %v1946_v19 = vmul.f32 %v2461_v2, %v1930_v46  ;;  %v1957_v5 = vadd.f32 %v2072_v63, %v1951_v42 }
 0xc0a   :  { %v1952_v59 = vmul.f32 %v2071_v60, %v1946_v19  ;;  %v1959_v62 = vmul.f32 %v1957_v5, %v2796_v53 }
 0xc0c   :  { %v1958_v6 = vadd.f32 %v2072_v63, %v1952_v59  ;;  %v1961_v7 = vsel %vm92_vm1, %v1959_v62, 0.0 }
 0xc0d   :  { %1963 = vst [vmem:[#allocation7] sm:$0xff] %v1961_v7 }
 0xc0e   :  { %v1960_v8 = vmul.f32 %v1958_v6, %v2798_v54 }
 0xc10   :  { %v1962_v9 = vsel %vm92_vm1, %v1960_v8, 0.0 }
 0xc11   :  { %1964 = vst [vmem:[#allocation7 + $0x8] sm:$0xff] %v1962_v9 }
 0xc12   :  { %2533 = shalt.err (!%p2530_p5)
}
 0xc13   :  { %1984 = dma.vmem_to_hbm [thread:$0]  %s1979_s10, 256, %s3021_s7, [#allocation4], %s2562_s24, %s2562_s24, %s2563_s25  }
 0xc14   :  { %2546 = dma.done.wait [#allocation4], 256  }
 0xc15   :  { %2547 = vsyncadd [#allocation4], 4294967040 }
 0xc16   :  { %2548 = dma.done.wait [#allocation9], 512  }
 0xc17   :  { %2549 = vsyncadd [#allocation9], 4294966784 }
 0xc18   :  { %2003 = vsyncpa [#allocation3], 1 }
 0xc19   :  { %2004 = vsyncpa [#allocation6], 1 }
 0xc1a   :  { %2005 = vsyncpa [#allocation4], 1 }
 0xc1b   :  { %2006 = vsyncpa [#allocation9], 1 }

</bundles_post_ra>
